<compile_context>
chip_gen: v7x
topology: tpu7x:2x2x1
jax: 0.10.0
libtpu: 0.0.40
codegen_flags: <defaults>
</compile_context>

<pallas_src>
import jax
import jax.numpy as jnp
from jax.experimental import pallas as pl
from jax.experimental.pallas import tpu as pltpu  # noqa: F401  (kept for TPU backend)

# ---------------- model config (small, consistent with the module) ----------
BATCH = 2
SEQ = 8
INPUT_SIZE = 16
HIDDEN = 32          # hidden_size (small version of the default 64)
NUM_CLASSES = 3
SUBLANE = 8          # f32 sublane width
GATE = 4 * HIDDEN    # 4H = 128 = lane width at this config


def lstm_net_kernel(x_ref,        # (T*Bp, I)  f32, time-major flattened, batch-padded
                    wih0_ref,     # (I, 4H)    layer-0 input weights (g-cols pre-scaled)
                    wstk_ref,     # (4H, 4H)   rows: [whh0; wih1; whh1; wfc_lane_pad]
                    b_ref,        # (8, 4H)    rows: 0=b0, 1=b1, 2=bfc_lane_pad, rest 0
                    out_ref):     # (Bp, 4H)
    TB = x_ref.shape[0]
    B = out_ref.shape[0]
    T = TB // B
    G = wstk_ref.shape[1]         # 4H
    H = G // 4

    # ---- hoist loop-invariant weights / biases (single load, single broadcast) ----
    whh0 = wstk_ref[0 * H:1 * H, :]                       # (H, 4H)
    wih1 = wstk_ref[1 * H:2 * H, :]                       # (H, 4H)
    whh1 = wstk_ref[2 * H:3 * H, :]                       # (H, 4H)
    b0 = b_ref[0:1, :]                                    # (1, 4H)
    b1b = jnp.broadcast_to(b_ref[1:2, :], (B, G))         # (B, 4H), broadcast once

    # ---- layer-0 input projection for ALL timesteps: one (T*B, I)@(I, 4H) matmul ----
    g0_all = jnp.dot(x_ref[...], wih0_ref[...],
                     preferred_element_type=jnp.float32) + b0       # (T*B, 4H)

    def act(gates):
        # single whole-block EUP pass: g-gate columns of weights/biases were
        # pre-scaled by 2, so tanh(g) = 2*sigmoid(2g) - 1 (one VPU fma).
        sg = jax.nn.sigmoid(gates)
        return (sg[:, 0 * H:1 * H],                 # i
                sg[:, 1 * H:2 * H],                 # f
                2.0 * sg[:, 2 * H:3 * H] - 1.0,     # tanh(g)
                sg[:, 3 * H:4 * H])                 # o

    h0 = c0 = h1 = c1 = jnp.zeros((B, H), jnp.float32)

    # T is small & static: straight-line unroll so the scheduler can overlap the
    # off-critical-path h1@Whh1 matmul with the layer-0 cell of the same step.
    for t in range(T):
        # layer-1 recurrent half: depends only on previous h1 -> issue early
        g1_part = jnp.dot(h1, whh1, preferred_element_type=jnp.float32) + b1b

        # layer 0: only the recurrent matmul sits on the serial chain
        g0 = g0_all[t * B:(t + 1) * B, :] + jnp.dot(
            h0, whh0, preferred_element_type=jnp.float32)
        i0, f0, gg0, o0 = act(g0)
        c0 = f0 * c0 + i0 * gg0
        h0 = o0 * jnp.tanh(c0)

        # layer 1: only this (B,H)@(H,4H) push waits on the fresh h0
        g1 = g1_part + jnp.dot(h0, wih1, preferred_element_type=jnp.float32)
        i1, f1, gg1, o1 = act(g1)
        c1 = f1 * c1 + i1 * gg1
        h1 = o1 * jnp.tanh(c1)

    # fc: h_last @ Wfc (lane-padded) + bfc -> lane-dense, unmasked store
    wfc = wstk_ref[3 * H:4 * H, :]                         # (H, 4H), cols >= 3 are zero
    out_ref[...] = (jnp.dot(h1, wfc, preferred_element_type=jnp.float32)
                    + b_ref[2:3, :]).astype(out_ref.dtype)


# ---------------- one-time parameter packing (hoisted out of the forward) ----
def prepare_params(params):
    """Pack the math parameters into kernel-ready arrays.  Run ONCE, not per call."""
    H = params["whh0"].shape[0]
    G = 4 * H

    def scale_g(w):
        # tanh(x) = 2*sigmoid(2x) - 1: pre-scale g-gate columns by 2 so the kernel
        # needs a single sigmoid pass per gate block.
        return w.at[..., 2 * H:3 * H].multiply(2.0)

    wfc_pad = jnp.pad(params["wfc"], ((0, 0), (0, G - params["wfc"].shape[1])))
    wstk = jnp.concatenate([scale_g(params["whh0"]),
                            scale_g(params["wih1"]),
                            scale_g(params["whh1"]),
                            wfc_pad], axis=0)                         # (4H, 4H)

    b_all = jnp.zeros((SUBLANE, G), jnp.float32)
    b_all = b_all.at[0, :].set(scale_g(params["b0"])[0])
    b_all = b_all.at[1, :].set(scale_g(params["b1"])[0])
    b_all = b_all.at[2, :params["bfc"].shape[1]].set(params["bfc"][0])

    return {"wih0": scale_g(params["wih0"]),    # (I, 4H)
            "wstk": wstk,                       # (4H, 4H)
            "b_all": b_all}                     # (8, 4H)


# ---------------- per-call wrapper: only x is transformed here -----------------
def lstm_net_pallas(x_btI, kparams):
    """x_btI: (B, T, I) float32, batch_first — same convention as the PyTorch forward.
    kparams: output of prepare_params()."""
    B, T, I = x_btI.shape
    G = kparams["wstk"].shape[1]

    # sublane-pad the batch so every VPU/EUP/MXU op runs at full occupancy
    B_pad = max(SUBLANE, ((B + SUBLANE - 1) // SUBLANE) * SUBLANE)

    x_tbI = jnp.transpose(x_btI, (1, 0, 2))                 # (T, B, I) time-major
    if B_pad != B:
        x_tbI = jnp.pad(x_tbI, ((0, 0), (0, B_pad - B), (0, 0)))
    x_flat = x_tbI.reshape(T * B_pad, I)

    out = pl.pallas_call(
        lstm_net_kernel,
        out_shape=jax.ShapeDtypeStruct((B_pad, G), jnp.float32),
    )(x_flat, kparams["wih0"], kparams["wstk"], kparams["b_all"])

    return out[:B, :NUM_CLASSES]


# ---------------- deterministic parameter init (shapes from nn.LSTM/Linear) ----
def init_params(key, input_size, hidden):
    ks = jax.random.split(key, 10)
    scale = 1.0 / jnp.sqrt(hidden)

    def u(k, shape):
        return jax.random.uniform(k, shape, jnp.float32, -scale, scale)

    # PyTorch stores W_ih (4H, in), W_hh (4H, H); we keep transposed copies.
    wih0 = u(ks[0], (input_size, 4 * hidden))
    whh0 = u(ks[1], (hidden, 4 * hidden))
    b_ih0 = u(ks[2], (4 * hidden,))
    b_hh0 = u(ks[3], (4 * hidden,))
    wih1 = u(ks[4], (hidden, 4 * hidden))
    whh1 = u(ks[5], (hidden, 4 * hidden))
    b_ih1 = u(ks[6], (4 * hidden,))
    b_hh1 = u(ks[7], (4 * hidden,))
    wfc = u(ks[8], (hidden, NUM_CLASSES))
    bfc = u(ks[9], (NUM_CLASSES,))

    return {
        "wih0": wih0, "whh0": whh0, "b0": (b_ih0 + b_hh0).reshape(1, -1),
        "wih1": wih1, "whh1": whh1, "b1": (b_ih1 + b_hh1).reshape(1, -1),
        "wfc": wfc, "bfc": bfc.reshape(1, -1),
    }


# ---------------- pure-JAX reference (mirrors torch.nn.LSTM semantics) --------
def lstm_net_ref(x_btI, params):
    B, T, I = x_btI.shape
    H = params["whh0"].shape[0]

    def cell(x_in, h, c, wih, whh, b):
        g = x_in @ wih + h @ whh + b
        i = jax.nn.sigmoid(g[:, 0 * H:1 * H])
        f = jax.nn.sigmoid(g[:, 1 * H:2 * H])
        gg = jnp.tanh(g[:, 2 * H:3 * H])
        o = jax.nn.sigmoid(g[:, 3 * H:4 * H])
        c = f * c + i * gg
        h = o * jnp.tanh(c)
        return h, c

    h0 = c0 = h1 = c1 = jnp.zeros((B, H), jnp.float32)
    for t in range(T):
        h0, c0 = cell(x_btI[:, t, :], h0, c0,
                      params["wih0"], params["whh0"], params["b0"])
        h1, c1 = cell(h0, h1, c1,
                      params["wih1"], params["whh1"], params["b1"])
    return h1 @ params["wfc"] + params["bfc"]


if __name__ == "__main__":
    key = jax.random.PRNGKey(0)
    kx, kp = jax.random.split(key)
    x = jax.random.normal(kx, (BATCH, SEQ, INPUT_SIZE), jnp.float32)
    params = init_params(kp, INPUT_SIZE, HIDDEN)

    kparams = prepare_params(params)            # one-time packing, outside the forward
    out = lstm_net_pallas(x, kparams)
    out = jax.block_until_ready(out)

    ref = lstm_net_ref(x, params)
    assert out.shape == (BATCH, NUM_CLASSES)
    assert jnp.allclose(out, ref, rtol=1e-4, atol=1e-4)

    print("KERNEL_OK")
</pallas_src>

<mosaic_0001>
module attributes {stable_mosaic.version = 11 : i64} {
  func.func @lstm_net_kernel(%arg0: memref<64x16xf32, #tpu.memory_space<vmem>>, %arg1: memref<16x128xf32, #tpu.memory_space<vmem>>, %arg2: memref<128x128xf32, #tpu.memory_space<vmem>>, %arg3: memref<8x128xf32, #tpu.memory_space<vmem>>, %arg4: memref<8x128xf32, #tpu.memory_space<vmem>>) attributes {dimension_semantics = [], scalar_prefetch = 0 : i64, scratch_operands = 0 : i64, tpu.core_type = #tpu.core_type<tc>} {
    %c0 = arith.constant 0 : index
    %c0_0 = arith.constant 0 : index
    %0 = vector.load %arg2[%c0, %c0_0] : memref<128x128xf32, #tpu.memory_space<vmem>>, vector<32x128xf32>
    %c32 = arith.constant 32 : index
    %c0_1 = arith.constant 0 : index
    %1 = vector.load %arg2[%c32, %c0_1] : memref<128x128xf32, #tpu.memory_space<vmem>>, vector<32x128xf32>
    %c64 = arith.constant 64 : index
    %c0_2 = arith.constant 0 : index
    %2 = vector.load %arg2[%c64, %c0_2] : memref<128x128xf32, #tpu.memory_space<vmem>>, vector<32x128xf32>
    %c0_3 = arith.constant 0 : index
    %c0_4 = arith.constant 0 : index
    %3 = vector.load %arg3[%c0_3, %c0_4] : memref<8x128xf32, #tpu.memory_space<vmem>>, vector<1x128xf32>
    %c1 = arith.constant 1 : index
    %c0_5 = arith.constant 0 : index
    %4 = vector.load %arg3[%c1, %c0_5] : memref<8x128xf32, #tpu.memory_space<vmem>>, vector<1x128xf32>
    %5 = vector.shape_cast %4 : vector<1x128xf32> to vector<1x128xf32>
    %6 = vector.broadcast %5 : vector<1x128xf32> to vector<8x128xf32>
    %c0_6 = arith.constant 0 : index
    %c0_7 = arith.constant 0 : index
    %7 = vector.load %arg0[%c0_6, %c0_7] : memref<64x16xf32, #tpu.memory_space<vmem>>, vector<64x16xf32>
    %c0_8 = arith.constant 0 : index
    %c0_9 = arith.constant 0 : index
    %8 = vector.load %arg1[%c0_8, %c0_9] : memref<16x128xf32, #tpu.memory_space<vmem>>, vector<16x128xf32>
    %cst = arith.constant dense<0.000000e+00> : vector<64x128xf32>
    %9 = tpu.matmul %7, %8, %cst {dimension_numbers = #tpu.dot_dimension_numbers<[1], [0], [0], [1], [0, 0, 1, 1], [], []>} : vector<64x16xf32>, vector<16x128xf32>, vector<64x128xf32> -> vector<64x128xf32>
    %10 = vector.broadcast %3 : vector<1x128xf32> to vector<64x128xf32>
    %11 = arith.addf %9, %10 : vector<64x128xf32>
    %cst_10 = arith.constant 0.000000e+00 : f32
    %12 = vector.broadcast %cst_10 : f32 to vector<8x32xf32>
    %cst_11 = arith.constant dense<0.000000e+00> : vector<8x128xf32>
    %13 = tpu.matmul %12, %2, %cst_11 {dimension_numbers = #tpu.dot_dimension_numbers<[1], [0], [0], [1], [0, 0, 1, 1], [], []>} : vector<8x32xf32>, vector<32x128xf32>, vector<8x128xf32> -> vector<8x128xf32>
    %14 = arith.addf %13, %6 : vector<8x128xf32>
    %15 = vector.extract_strided_slice %11 {offsets = [0, 0], sizes = [8, 128], strides = [1, 1]} : vector<64x128xf32> to vector<8x128xf32>
    %cst_12 = arith.constant dense<0.000000e+00> : vector<8x128xf32>
    %16 = tpu.matmul %12, %0, %cst_12 {dimension_numbers = #tpu.dot_dimension_numbers<[1], [0], [0], [1], [0, 0, 1, 1], [], []>} : vector<8x32xf32>, vector<32x128xf32>, vector<8x128xf32> -> vector<8x128xf32>
    %17 = arith.addf %15, %16 : vector<8x128xf32>
    %18 = arith.negf %17 : vector<8x128xf32>
    %19 = math.exp %18 : vector<8x128xf32>
    %cst_13 = arith.constant 1.000000e+00 : f32
    %20 = vector.broadcast %cst_13 : f32 to vector<8x128xf32>
    %21 = arith.addf %20, %19 : vector<8x128xf32>
    %22 = arith.divf %20, %21 : vector<8x128xf32>
    %23 = vector.extract_strided_slice %22 {offsets = [0, 0], sizes = [8, 32], strides = [1, 1]} : vector<8x128xf32> to vector<8x32xf32>
    %24 = vector.extract_strided_slice %22 {offsets = [0, 32], sizes = [8, 32], strides = [1, 1]} : vector<8x128xf32> to vector<8x32xf32>
    %25 = vector.extract_strided_slice %22 {offsets = [0, 64], sizes = [8, 32], strides = [1, 1]} : vector<8x128xf32> to vector<8x32xf32>
    %cst_14 = arith.constant 2.000000e+00 : f32
    %26 = vector.broadcast %cst_14 : f32 to vector<8x32xf32>
    %27 = arith.mulf %26, %25 : vector<8x32xf32>
    %cst_15 = arith.constant 1.000000e+00 : f32
    %28 = vector.broadcast %cst_15 : f32 to vector<8x32xf32>
    %29 = arith.subf %27, %28 : vector<8x32xf32>
    %30 = vector.extract_strided_slice %22 {offsets = [0, 96], sizes = [8, 32], strides = [1, 1]} : vector<8x128xf32> to vector<8x32xf32>
    %31 = arith.mulf %24, %12 : vector<8x32xf32>
    %32 = arith.mulf %23, %29 : vector<8x32xf32>
    %33 = arith.addf %31, %32 : vector<8x32xf32>
    %34 = math.tanh %33 : vector<8x32xf32>
    %35 = arith.mulf %30, %34 : vector<8x32xf32>
    %cst_16 = arith.constant dense<0.000000e+00> : vector<8x128xf32>
    %36 = tpu.matmul %35, %1, %cst_16 {dimension_numbers = #tpu.dot_dimension_numbers<[1], [0], [0], [1], [0, 0, 1, 1], [], []>} : vector<8x32xf32>, vector<32x128xf32>, vector<8x128xf32> -> vector<8x128xf32>
    %37 = arith.addf %14, %36 : vector<8x128xf32>
    %38 = arith.negf %37 : vector<8x128xf32>
    %39 = math.exp %38 : vector<8x128xf32>
    %cst_17 = arith.constant 1.000000e+00 : f32
    %40 = vector.broadcast %cst_17 : f32 to vector<8x128xf32>
    %41 = arith.addf %40, %39 : vector<8x128xf32>
    %42 = arith.divf %40, %41 : vector<8x128xf32>
    %43 = vector.extract_strided_slice %42 {offsets = [0, 0], sizes = [8, 32], strides = [1, 1]} : vector<8x128xf32> to vector<8x32xf32>
    %44 = vector.extract_strided_slice %42 {offsets = [0, 32], sizes = [8, 32], strides = [1, 1]} : vector<8x128xf32> to vector<8x32xf32>
    %45 = vector.extract_strided_slice %42 {offsets = [0, 64], sizes = [8, 32], strides = [1, 1]} : vector<8x128xf32> to vector<8x32xf32>
    %cst_18 = arith.constant 2.000000e+00 : f32
    %46 = vector.broadcast %cst_18 : f32 to vector<8x32xf32>
    %47 = arith.mulf %46, %45 : vector<8x32xf32>
    %cst_19 = arith.constant 1.000000e+00 : f32
    %48 = vector.broadcast %cst_19 : f32 to vector<8x32xf32>
    %49 = arith.subf %47, %48 : vector<8x32xf32>
    %50 = vector.extract_strided_slice %42 {offsets = [0, 96], sizes = [8, 32], strides = [1, 1]} : vector<8x128xf32> to vector<8x32xf32>
    %51 = arith.mulf %44, %12 : vector<8x32xf32>
    %52 = arith.mulf %43, %49 : vector<8x32xf32>
    %53 = arith.addf %51, %52 : vector<8x32xf32>
    %54 = math.tanh %53 : vector<8x32xf32>
    %55 = arith.mulf %50, %54 : vector<8x32xf32>
    %cst_20 = arith.constant dense<0.000000e+00> : vector<8x128xf32>
    %56 = tpu.matmul %55, %2, %cst_20 {dimension_numbers = #tpu.dot_dimension_numbers<[1], [0], [0], [1], [0, 0, 1, 1], [], []>} : vector<8x32xf32>, vector<32x128xf32>, vector<8x128xf32> -> vector<8x128xf32>
    %57 = arith.addf %56, %6 : vector<8x128xf32>
    %58 = vector.extract_strided_slice %11 {offsets = [8, 0], sizes = [8, 128], strides = [1, 1]} : vector<64x128xf32> to vector<8x128xf32>
    %cst_21 = arith.constant dense<0.000000e+00> : vector<8x128xf32>
    %59 = tpu.matmul %35, %0, %cst_21 {dimension_numbers = #tpu.dot_dimension_numbers<[1], [0], [0], [1], [0, 0, 1, 1], [], []>} : vector<8x32xf32>, vector<32x128xf32>, vector<8x128xf32> -> vector<8x128xf32>
    %60 = arith.addf %58, %59 : vector<8x128xf32>
    %61 = arith.negf %60 : vector<8x128xf32>
    %62 = math.exp %61 : vector<8x128xf32>
    %cst_22 = arith.constant 1.000000e+00 : f32
    %63 = vector.broadcast %cst_22 : f32 to vector<8x128xf32>
    %64 = arith.addf %63, %62 : vector<8x128xf32>
    %65 = arith.divf %63, %64 : vector<8x128xf32>
    %66 = vector.extract_strided_slice %65 {offsets = [0, 0], sizes = [8, 32], strides = [1, 1]} : vector<8x128xf32> to vector<8x32xf32>
    %67 = vector.extract_strided_slice %65 {offsets = [0, 32], sizes = [8, 32], strides = [1, 1]} : vector<8x128xf32> to vector<8x32xf32>
    %68 = vector.extract_strided_slice %65 {offsets = [0, 64], sizes = [8, 32], strides = [1, 1]} : vector<8x128xf32> to vector<8x32xf32>
    %cst_23 = arith.constant 2.000000e+00 : f32
    %69 = vector.broadcast %cst_23 : f32 to vector<8x32xf32>
    %70 = arith.mulf %69, %68 : vector<8x32xf32>
    %cst_24 = arith.constant 1.000000e+00 : f32
    %71 = vector.broadcast %cst_24 : f32 to vector<8x32xf32>
    %72 = arith.subf %70, %71 : vector<8x32xf32>
    %73 = vector.extract_strided_slice %65 {offsets = [0, 96], sizes = [8, 32], strides = [1, 1]} : vector<8x128xf32> to vector<8x32xf32>
    %74 = arith.mulf %67, %33 : vector<8x32xf32>
    %75 = arith.mulf %66, %72 : vector<8x32xf32>
    %76 = arith.addf %74, %75 : vector<8x32xf32>
    %77 = math.tanh %76 : vector<8x32xf32>
    %78 = arith.mulf %73, %77 : vector<8x32xf32>
    %cst_25 = arith.constant dense<0.000000e+00> : vector<8x128xf32>
    %79 = tpu.matmul %78, %1, %cst_25 {dimension_numbers = #tpu.dot_dimension_numbers<[1], [0], [0], [1], [0, 0, 1, 1], [], []>} : vector<8x32xf32>, vector<32x128xf32>, vector<8x128xf32> -> vector<8x128xf32>
    %80 = arith.addf %57, %79 : vector<8x128xf32>
    %81 = arith.negf %80 : vector<8x128xf32>
    %82 = math.exp %81 : vector<8x128xf32>
    %cst_26 = arith.constant 1.000000e+00 : f32
    %83 = vector.broadcast %cst_26 : f32 to vector<8x128xf32>
    %84 = arith.addf %83, %82 : vector<8x128xf32>
    %85 = arith.divf %83, %84 : vector<8x128xf32>
    %86 = vector.extract_strided_slice %85 {offsets = [0, 0], sizes = [8, 32], strides = [1, 1]} : vector<8x128xf32> to vector<8x32xf32>
    %87 = vector.extract_strided_slice %85 {offsets = [0, 32], sizes = [8, 32], strides = [1, 1]} : vector<8x128xf32> to vector<8x32xf32>
    %88 = vector.extract_strided_slice %85 {offsets = [0, 64], sizes = [8, 32], strides = [1, 1]} : vector<8x128xf32> to vector<8x32xf32>
    %cst_27 = arith.constant 2.000000e+00 : f32
    %89 = vector.broadcast %cst_27 : f32 to vector<8x32xf32>
    %90 = arith.mulf %89, %88 : vector<8x32xf32>
    %cst_28 = arith.constant 1.000000e+00 : f32
    %91 = vector.broadcast %cst_28 : f32 to vector<8x32xf32>
    %92 = arith.subf %90, %91 : vector<8x32xf32>
    %93 = vector.extract_strided_slice %85 {offsets = [0, 96], sizes = [8, 32], strides = [1, 1]} : vector<8x128xf32> to vector<8x32xf32>
    %94 = arith.mulf %87, %53 : vector<8x32xf32>
    %95 = arith.mulf %86, %92 : vector<8x32xf32>
    %96 = arith.addf %94, %95 : vector<8x32xf32>
    %97 = math.tanh %96 : vector<8x32xf32>
    %98 = arith.mulf %93, %97 : vector<8x32xf32>
    %cst_29 = arith.constant dense<0.000000e+00> : vector<8x128xf32>
    %99 = tpu.matmul %98, %2, %cst_29 {dimension_numbers = #tpu.dot_dimension_numbers<[1], [0], [0], [1], [0, 0, 1, 1], [], []>} : vector<8x32xf32>, vector<32x128xf32>, vector<8x128xf32> -> vector<8x128xf32>
    %100 = arith.addf %99, %6 : vector<8x128xf32>
    %101 = vector.extract_strided_slice %11 {offsets = [16, 0], sizes = [8, 128], strides = [1, 1]} : vector<64x128xf32> to vector<8x128xf32>
    %cst_30 = arith.constant dense<0.000000e+00> : vector<8x128xf32>
    %102 = tpu.matmul %78, %0, %cst_30 {dimension_numbers = #tpu.dot_dimension_numbers<[1], [0], [0], [1], [0, 0, 1, 1], [], []>} : vector<8x32xf32>, vector<32x128xf32>, vector<8x128xf32> -> vector<8x128xf32>
    %103 = arith.addf %101, %102 : vector<8x128xf32>
    %104 = arith.negf %103 : vector<8x128xf32>
    %105 = math.exp %104 : vector<8x128xf32>
    %cst_31 = arith.constant 1.000000e+00 : f32
    %106 = vector.broadcast %cst_31 : f32 to vector<8x128xf32>
    %107 = arith.addf %106, %105 : vector<8x128xf32>
    %108 = arith.divf %106, %107 : vector<8x128xf32>
    %109 = vector.extract_strided_slice %108 {offsets = [0, 0], sizes = [8, 32], strides = [1, 1]} : vector<8x128xf32> to vector<8x32xf32>
    %110 = vector.extract_strided_slice %108 {offsets = [0, 32], sizes = [8, 32], strides = [1, 1]} : vector<8x128xf32> to vector<8x32xf32>
    %111 = vector.extract_strided_slice %108 {offsets = [0, 64], sizes = [8, 32], strides = [1, 1]} : vector<8x128xf32> to vector<8x32xf32>
    %cst_32 = arith.constant 2.000000e+00 : f32
    %112 = vector.broadcast %cst_32 : f32 to vector<8x32xf32>
    %113 = arith.mulf %112, %111 : vector<8x32xf32>
    %cst_33 = arith.constant 1.000000e+00 : f32
    %114 = vector.broadcast %cst_33 : f32 to vector<8x32xf32>
    %115 = arith.subf %113, %114 : vector<8x32xf32>
    %116 = vector.extract_strided_slice %108 {offsets = [0, 96], sizes = [8, 32], strides = [1, 1]} : vector<8x128xf32> to vector<8x32xf32>
    %117 = arith.mulf %110, %76 : vector<8x32xf32>
    %118 = arith.mulf %109, %115 : vector<8x32xf32>
    %119 = arith.addf %117, %118 : vector<8x32xf32>
    %120 = math.tanh %119 : vector<8x32xf32>
    %121 = arith.mulf %116, %120 : vector<8x32xf32>
    %cst_34 = arith.constant dense<0.000000e+00> : vector<8x128xf32>
    %122 = tpu.matmul %121, %1, %cst_34 {dimension_numbers = #tpu.dot_dimension_numbers<[1], [0], [0], [1], [0, 0, 1, 1], [], []>} : vector<8x32xf32>, vector<32x128xf32>, vector<8x128xf32> -> vector<8x128xf32>
    %123 = arith.addf %100, %122 : vector<8x128xf32>
    %124 = arith.negf %123 : vector<8x128xf32>
    %125 = math.exp %124 : vector<8x128xf32>
    %cst_35 = arith.constant 1.000000e+00 : f32
    %126 = vector.broadcast %cst_35 : f32 to vector<8x128xf32>
    %127 = arith.addf %126, %125 : vector<8x128xf32>
    %128 = arith.divf %126, %127 : vector<8x128xf32>
    %129 = vector.extract_strided_slice %128 {offsets = [0, 0], sizes = [8, 32], strides = [1, 1]} : vector<8x128xf32> to vector<8x32xf32>
    %130 = vector.extract_strided_slice %128 {offsets = [0, 32], sizes = [8, 32], strides = [1, 1]} : vector<8x128xf32> to vector<8x32xf32>
    %131 = vector.extract_strided_slice %128 {offsets = [0, 64], sizes = [8, 32], strides = [1, 1]} : vector<8x128xf32> to vector<8x32xf32>
    %cst_36 = arith.constant 2.000000e+00 : f32
    %132 = vector.broadcast %cst_36 : f32 to vector<8x32xf32>
    %133 = arith.mulf %132, %131 : vector<8x32xf32>
    %cst_37 = arith.constant 1.000000e+00 : f32
    %134 = vector.broadcast %cst_37 : f32 to vector<8x32xf32>
    %135 = arith.subf %133, %134 : vector<8x32xf32>
    %136 = vector.extract_strided_slice %128 {offsets = [0, 96], sizes = [8, 32], strides = [1, 1]} : vector<8x128xf32> to vector<8x32xf32>
    %137 = arith.mulf %130, %96 : vector<8x32xf32>
    %138 = arith.mulf %129, %135 : vector<8x32xf32>
    %139 = arith.addf %137, %138 : vector<8x32xf32>
    %140 = math.tanh %139 : vector<8x32xf32>
    %141 = arith.mulf %136, %140 : vector<8x32xf32>
    %cst_38 = arith.constant dense<0.000000e+00> : vector<8x128xf32>
    %142 = tpu.matmul %141, %2, %cst_38 {dimension_numbers = #tpu.dot_dimension_numbers<[1], [0], [0], [1], [0, 0, 1, 1], [], []>} : vector<8x32xf32>, vector<32x128xf32>, vector<8x128xf32> -> vector<8x128xf32>
    %143 = arith.addf %142, %6 : vector<8x128xf32>
    %144 = vector.extract_strided_slice %11 {offsets = [24, 0], sizes = [8, 128], strides = [1, 1]} : vector<64x128xf32> to vector<8x128xf32>
    %cst_39 = arith.constant dense<0.000000e+00> : vector<8x128xf32>
    %145 = tpu.matmul %121, %0, %cst_39 {dimension_numbers = #tpu.dot_dimension_numbers<[1], [0], [0], [1], [0, 0, 1, 1], [], []>} : vector<8x32xf32>, vector<32x128xf32>, vector<8x128xf32> -> vector<8x128xf32>
    %146 = arith.addf %144, %145 : vector<8x128xf32>
    %147 = arith.negf %146 : vector<8x128xf32>
    %148 = math.exp %147 : vector<8x128xf32>
    %cst_40 = arith.constant 1.000000e+00 : f32
    %149 = vector.broadcast %cst_40 : f32 to vector<8x128xf32>
    %150 = arith.addf %149, %148 : vector<8x128xf32>
    %151 = arith.divf %149, %150 : vector<8x128xf32>
    %152 = vector.extract_strided_slice %151 {offsets = [0, 0], sizes = [8, 32], strides = [1, 1]} : vector<8x128xf32> to vector<8x32xf32>
    %153 = vector.extract_strided_slice %151 {offsets = [0, 32], sizes = [8, 32], strides = [1, 1]} : vector<8x128xf32> to vector<8x32xf32>
    %154 = vector.extract_strided_slice %151 {offsets = [0, 64], sizes = [8, 32], strides = [1, 1]} : vector<8x128xf32> to vector<8x32xf32>
    %cst_41 = arith.constant 2.000000e+00 : f32
    %155 = vector.broadcast %cst_41 : f32 to vector<8x32xf32>
    %156 = arith.mulf %155, %154 : vector<8x32xf32>
    %cst_42 = arith.constant 1.000000e+00 : f32
    %157 = vector.broadcast %cst_42 : f32 to vector<8x32xf32>
    %158 = arith.subf %156, %157 : vector<8x32xf32>
    %159 = vector.extract_strided_slice %151 {offsets = [0, 96], sizes = [8, 32], strides = [1, 1]} : vector<8x128xf32> to vector<8x32xf32>
    %160 = arith.mulf %153, %119 : vector<8x32xf32>
    %161 = arith.mulf %152, %158 : vector<8x32xf32>
    %162 = arith.addf %160, %161 : vector<8x32xf32>
    %163 = math.tanh %162 : vector<8x32xf32>
    %164 = arith.mulf %159, %163 : vector<8x32xf32>
    %cst_43 = arith.constant dense<0.000000e+00> : vector<8x128xf32>
    %165 = tpu.matmul %164, %1, %cst_43 {dimension_numbers = #tpu.dot_dimension_numbers<[1], [0], [0], [1], [0, 0, 1, 1], [], []>} : vector<8x32xf32>, vector<32x128xf32>, vector<8x128xf32> -> vector<8x128xf32>
    %166 = arith.addf %143, %165 : vector<8x128xf32>
    %167 = arith.negf %166 : vector<8x128xf32>
    %168 = math.exp %167 : vector<8x128xf32>
    %cst_44 = arith.constant 1.000000e+00 : f32
    %169 = vector.broadcast %cst_44 : f32 to vector<8x128xf32>
    %170 = arith.addf %169, %168 : vector<8x128xf32>
    %171 = arith.divf %169, %170 : vector<8x128xf32>
    %172 = vector.extract_strided_slice %171 {offsets = [0, 0], sizes = [8, 32], strides = [1, 1]} : vector<8x128xf32> to vector<8x32xf32>
    %173 = vector.extract_strided_slice %171 {offsets = [0, 32], sizes = [8, 32], strides = [1, 1]} : vector<8x128xf32> to vector<8x32xf32>
    %174 = vector.extract_strided_slice %171 {offsets = [0, 64], sizes = [8, 32], strides = [1, 1]} : vector<8x128xf32> to vector<8x32xf32>
    %cst_45 = arith.constant 2.000000e+00 : f32
    %175 = vector.broadcast %cst_45 : f32 to vector<8x32xf32>
    %176 = arith.mulf %175, %174 : vector<8x32xf32>
    %cst_46 = arith.constant 1.000000e+00 : f32
    %177 = vector.broadcast %cst_46 : f32 to vector<8x32xf32>
    %178 = arith.subf %176, %177 : vector<8x32xf32>
    %179 = vector.extract_strided_slice %171 {offsets = [0, 96], sizes = [8, 32], strides = [1, 1]} : vector<8x128xf32> to vector<8x32xf32>
    %180 = arith.mulf %173, %139 : vector<8x32xf32>
    %181 = arith.mulf %172, %178 : vector<8x32xf32>
    %182 = arith.addf %180, %181 : vector<8x32xf32>
    %183 = math.tanh %182 : vector<8x32xf32>
    %184 = arith.mulf %179, %183 : vector<8x32xf32>
    %cst_47 = arith.constant dense<0.000000e+00> : vector<8x128xf32>
    %185 = tpu.matmul %184, %2, %cst_47 {dimension_numbers = #tpu.dot_dimension_numbers<[1], [0], [0], [1], [0, 0, 1, 1], [], []>} : vector<8x32xf32>, vector<32x128xf32>, vector<8x128xf32> -> vector<8x128xf32>
    %186 = arith.addf %185, %6 : vector<8x128xf32>
    %187 = vector.extract_strided_slice %11 {offsets = [32, 0], sizes = [8, 128], strides = [1, 1]} : vector<64x128xf32> to vector<8x128xf32>
    %cst_48 = arith.constant dense<0.000000e+00> : vector<8x128xf32>
    %188 = tpu.matmul %164, %0, %cst_48 {dimension_numbers = #tpu.dot_dimension_numbers<[1], [0], [0], [1], [0, 0, 1, 1], [], []>} : vector<8x32xf32>, vector<32x128xf32>, vector<8x128xf32> -> vector<8x128xf32>
    %189 = arith.addf %187, %188 : vector<8x128xf32>
    %190 = arith.negf %189 : vector<8x128xf32>
    %191 = math.exp %190 : vector<8x128xf32>
    %cst_49 = arith.constant 1.000000e+00 : f32
    %192 = vector.broadcast %cst_49 : f32 to vector<8x128xf32>
    %193 = arith.addf %192, %191 : vector<8x128xf32>
    %194 = arith.divf %192, %193 : vector<8x128xf32>
    %195 = vector.extract_strided_slice %194 {offsets = [0, 0], sizes = [8, 32], strides = [1, 1]} : vector<8x128xf32> to vector<8x32xf32>
    %196 = vector.extract_strided_slice %194 {offsets = [0, 32], sizes = [8, 32], strides = [1, 1]} : vector<8x128xf32> to vector<8x32xf32>
    %197 = vector.extract_strided_slice %194 {offsets = [0, 64], sizes = [8, 32], strides = [1, 1]} : vector<8x128xf32> to vector<8x32xf32>
    %cst_50 = arith.constant 2.000000e+00 : f32
    %198 = vector.broadcast %cst_50 : f32 to vector<8x32xf32>
    %199 = arith.mulf %198, %197 : vector<8x32xf32>
    %cst_51 = arith.constant 1.000000e+00 : f32
    %200 = vector.broadcast %cst_51 : f32 to vector<8x32xf32>
    %201 = arith.subf %199, %200 : vector<8x32xf32>
    %202 = vector.extract_strided_slice %194 {offsets = [0, 96], sizes = [8, 32], strides = [1, 1]} : vector<8x128xf32> to vector<8x32xf32>
    %203 = arith.mulf %196, %162 : vector<8x32xf32>
    %204 = arith.mulf %195, %201 : vector<8x32xf32>
    %205 = arith.addf %203, %204 : vector<8x32xf32>
    %206 = math.tanh %205 : vector<8x32xf32>
    %207 = arith.mulf %202, %206 : vector<8x32xf32>
    %cst_52 = arith.constant dense<0.000000e+00> : vector<8x128xf32>
    %208 = tpu.matmul %207, %1, %cst_52 {dimension_numbers = #tpu.dot_dimension_numbers<[1], [0], [0], [1], [0, 0, 1, 1], [], []>} : vector<8x32xf32>, vector<32x128xf32>, vector<8x128xf32> -> vector<8x128xf32>
    %209 = arith.addf %186, %208 : vector<8x128xf32>
    %210 = arith.negf %209 : vector<8x128xf32>
    %211 = math.exp %210 : vector<8x128xf32>
    %cst_53 = arith.constant 1.000000e+00 : f32
    %212 = vector.broadcast %cst_53 : f32 to vector<8x128xf32>
    %213 = arith.addf %212, %211 : vector<8x128xf32>
    %214 = arith.divf %212, %213 : vector<8x128xf32>
    %215 = vector.extract_strided_slice %214 {offsets = [0, 0], sizes = [8, 32], strides = [1, 1]} : vector<8x128xf32> to vector<8x32xf32>
    %216 = vector.extract_strided_slice %214 {offsets = [0, 32], sizes = [8, 32], strides = [1, 1]} : vector<8x128xf32> to vector<8x32xf32>
    %217 = vector.extract_strided_slice %214 {offsets = [0, 64], sizes = [8, 32], strides = [1, 1]} : vector<8x128xf32> to vector<8x32xf32>
    %cst_54 = arith.constant 2.000000e+00 : f32
    %218 = vector.broadcast %cst_54 : f32 to vector<8x32xf32>
    %219 = arith.mulf %218, %217 : vector<8x32xf32>
    %cst_55 = arith.constant 1.000000e+00 : f32
    %220 = vector.broadcast %cst_55 : f32 to vector<8x32xf32>
    %221 = arith.subf %219, %220 : vector<8x32xf32>
    %222 = vector.extract_strided_slice %214 {offsets = [0, 96], sizes = [8, 32], strides = [1, 1]} : vector<8x128xf32> to vector<8x32xf32>
    %223 = arith.mulf %216, %182 : vector<8x32xf32>
    %224 = arith.mulf %215, %221 : vector<8x32xf32>
    %225 = arith.addf %223, %224 : vector<8x32xf32>
    %226 = math.tanh %225 : vector<8x32xf32>
    %227 = arith.mulf %222, %226 : vector<8x32xf32>
    %cst_56 = arith.constant dense<0.000000e+00> : vector<8x128xf32>
    %228 = tpu.matmul %227, %2, %cst_56 {dimension_numbers = #tpu.dot_dimension_numbers<[1], [0], [0], [1], [0, 0, 1, 1], [], []>} : vector<8x32xf32>, vector<32x128xf32>, vector<8x128xf32> -> vector<8x128xf32>
    %229 = arith.addf %228, %6 : vector<8x128xf32>
    %230 = vector.extract_strided_slice %11 {offsets = [40, 0], sizes = [8, 128], strides = [1, 1]} : vector<64x128xf32> to vector<8x128xf32>
    %cst_57 = arith.constant dense<0.000000e+00> : vector<8x128xf32>
    %231 = tpu.matmul %207, %0, %cst_57 {dimension_numbers = #tpu.dot_dimension_numbers<[1], [0], [0], [1], [0, 0, 1, 1], [], []>} : vector<8x32xf32>, vector<32x128xf32>, vector<8x128xf32> -> vector<8x128xf32>
    %232 = arith.addf %230, %231 : vector<8x128xf32>
    %233 = arith.negf %232 : vector<8x128xf32>
    %234 = math.exp %233 : vector<8x128xf32>
    %cst_58 = arith.constant 1.000000e+00 : f32
    %235 = vector.broadcast %cst_58 : f32 to vector<8x128xf32>
    %236 = arith.addf %235, %234 : vector<8x128xf32>
    %237 = arith.divf %235, %236 : vector<8x128xf32>
    %238 = vector.extract_strided_slice %237 {offsets = [0, 0], sizes = [8, 32], strides = [1, 1]} : vector<8x128xf32> to vector<8x32xf32>
    %239 = vector.extract_strided_slice %237 {offsets = [0, 32], sizes = [8, 32], strides = [1, 1]} : vector<8x128xf32> to vector<8x32xf32>
    %240 = vector.extract_strided_slice %237 {offsets = [0, 64], sizes = [8, 32], strides = [1, 1]} : vector<8x128xf32> to vector<8x32xf32>
    %cst_59 = arith.constant 2.000000e+00 : f32
    %241 = vector.broadcast %cst_59 : f32 to vector<8x32xf32>
    %242 = arith.mulf %241, %240 : vector<8x32xf32>
    %cst_60 = arith.constant 1.000000e+00 : f32
    %243 = vector.broadcast %cst_60 : f32 to vector<8x32xf32>
    %244 = arith.subf %242, %243 : vector<8x32xf32>
    %245 = vector.extract_strided_slice %237 {offsets = [0, 96], sizes = [8, 32], strides = [1, 1]} : vector<8x128xf32> to vector<8x32xf32>
    %246 = arith.mulf %239, %205 : vector<8x32xf32>
    %247 = arith.mulf %238, %244 : vector<8x32xf32>
    %248 = arith.addf %246, %247 : vector<8x32xf32>
    %249 = math.tanh %248 : vector<8x32xf32>
    %250 = arith.mulf %245, %249 : vector<8x32xf32>
    %cst_61 = arith.constant dense<0.000000e+00> : vector<8x128xf32>
    %251 = tpu.matmul %250, %1, %cst_61 {dimension_numbers = #tpu.dot_dimension_numbers<[1], [0], [0], [1], [0, 0, 1, 1], [], []>} : vector<8x32xf32>, vector<32x128xf32>, vector<8x128xf32> -> vector<8x128xf32>
    %252 = arith.addf %229, %251 : vector<8x128xf32>
    %253 = arith.negf %252 : vector<8x128xf32>
    %254 = math.exp %253 : vector<8x128xf32>
    %cst_62 = arith.constant 1.000000e+00 : f32
    %255 = vector.broadcast %cst_62 : f32 to vector<8x128xf32>
    %256 = arith.addf %255, %254 : vector<8x128xf32>
    %257 = arith.divf %255, %256 : vector<8x128xf32>
    %258 = vector.extract_strided_slice %257 {offsets = [0, 0], sizes = [8, 32], strides = [1, 1]} : vector<8x128xf32> to vector<8x32xf32>
    %259 = vector.extract_strided_slice %257 {offsets = [0, 32], sizes = [8, 32], strides = [1, 1]} : vector<8x128xf32> to vector<8x32xf32>
    %260 = vector.extract_strided_slice %257 {offsets = [0, 64], sizes = [8, 32], strides = [1, 1]} : vector<8x128xf32> to vector<8x32xf32>
    %cst_63 = arith.constant 2.000000e+00 : f32
    %261 = vector.broadcast %cst_63 : f32 to vector<8x32xf32>
    %262 = arith.mulf %261, %260 : vector<8x32xf32>
    %cst_64 = arith.constant 1.000000e+00 : f32
    %263 = vector.broadcast %cst_64 : f32 to vector<8x32xf32>
    %264 = arith.subf %262, %263 : vector<8x32xf32>
    %265 = vector.extract_strided_slice %257 {offsets = [0, 96], sizes = [8, 32], strides = [1, 1]} : vector<8x128xf32> to vector<8x32xf32>
    %266 = arith.mulf %259, %225 : vector<8x32xf32>
    %267 = arith.mulf %258, %264 : vector<8x32xf32>
    %268 = arith.addf %266, %267 : vector<8x32xf32>
    %269 = math.tanh %268 : vector<8x32xf32>
    %270 = arith.mulf %265, %269 : vector<8x32xf32>
    %cst_65 = arith.constant dense<0.000000e+00> : vector<8x128xf32>
    %271 = tpu.matmul %270, %2, %cst_65 {dimension_numbers = #tpu.dot_dimension_numbers<[1], [0], [0], [1], [0, 0, 1, 1], [], []>} : vector<8x32xf32>, vector<32x128xf32>, vector<8x128xf32> -> vector<8x128xf32>
    %272 = arith.addf %271, %6 : vector<8x128xf32>
    %273 = vector.extract_strided_slice %11 {offsets = [48, 0], sizes = [8, 128], strides = [1, 1]} : vector<64x128xf32> to vector<8x128xf32>
    %cst_66 = arith.constant dense<0.000000e+00> : vector<8x128xf32>
    %274 = tpu.matmul %250, %0, %cst_66 {dimension_numbers = #tpu.dot_dimension_numbers<[1], [0], [0], [1], [0, 0, 1, 1], [], []>} : vector<8x32xf32>, vector<32x128xf32>, vector<8x128xf32> -> vector<8x128xf32>
    %275 = arith.addf %273, %274 : vector<8x128xf32>
    %276 = arith.negf %275 : vector<8x128xf32>
    %277 = math.exp %276 : vector<8x128xf32>
    %cst_67 = arith.constant 1.000000e+00 : f32
    %278 = vector.broadcast %cst_67 : f32 to vector<8x128xf32>
    %279 = arith.addf %278, %277 : vector<8x128xf32>
    %280 = arith.divf %278, %279 : vector<8x128xf32>
    %281 = vector.extract_strided_slice %280 {offsets = [0, 0], sizes = [8, 32], strides = [1, 1]} : vector<8x128xf32> to vector<8x32xf32>
    %282 = vector.extract_strided_slice %280 {offsets = [0, 32], sizes = [8, 32], strides = [1, 1]} : vector<8x128xf32> to vector<8x32xf32>
    %283 = vector.extract_strided_slice %280 {offsets = [0, 64], sizes = [8, 32], strides = [1, 1]} : vector<8x128xf32> to vector<8x32xf32>
    %cst_68 = arith.constant 2.000000e+00 : f32
    %284 = vector.broadcast %cst_68 : f32 to vector<8x32xf32>
    %285 = arith.mulf %284, %283 : vector<8x32xf32>
    %cst_69 = arith.constant 1.000000e+00 : f32
    %286 = vector.broadcast %cst_69 : f32 to vector<8x32xf32>
    %287 = arith.subf %285, %286 : vector<8x32xf32>
    %288 = vector.extract_strided_slice %280 {offsets = [0, 96], sizes = [8, 32], strides = [1, 1]} : vector<8x128xf32> to vector<8x32xf32>
    %289 = arith.mulf %282, %248 : vector<8x32xf32>
    %290 = arith.mulf %281, %287 : vector<8x32xf32>
    %291 = arith.addf %289, %290 : vector<8x32xf32>
    %292 = math.tanh %291 : vector<8x32xf32>
    %293 = arith.mulf %288, %292 : vector<8x32xf32>
    %cst_70 = arith.constant dense<0.000000e+00> : vector<8x128xf32>
    %294 = tpu.matmul %293, %1, %cst_70 {dimension_numbers = #tpu.dot_dimension_numbers<[1], [0], [0], [1], [0, 0, 1, 1], [], []>} : vector<8x32xf32>, vector<32x128xf32>, vector<8x128xf32> -> vector<8x128xf32>
    %295 = arith.addf %272, %294 : vector<8x128xf32>
    %296 = arith.negf %295 : vector<8x128xf32>
    %297 = math.exp %296 : vector<8x128xf32>
    %cst_71 = arith.constant 1.000000e+00 : f32
    %298 = vector.broadcast %cst_71 : f32 to vector<8x128xf32>
    %299 = arith.addf %298, %297 : vector<8x128xf32>
    %300 = arith.divf %298, %299 : vector<8x128xf32>
    %301 = vector.extract_strided_slice %300 {offsets = [0, 0], sizes = [8, 32], strides = [1, 1]} : vector<8x128xf32> to vector<8x32xf32>
    %302 = vector.extract_strided_slice %300 {offsets = [0, 32], sizes = [8, 32], strides = [1, 1]} : vector<8x128xf32> to vector<8x32xf32>
    %303 = vector.extract_strided_slice %300 {offsets = [0, 64], sizes = [8, 32], strides = [1, 1]} : vector<8x128xf32> to vector<8x32xf32>
    %cst_72 = arith.constant 2.000000e+00 : f32
    %304 = vector.broadcast %cst_72 : f32 to vector<8x32xf32>
    %305 = arith.mulf %304, %303 : vector<8x32xf32>
    %cst_73 = arith.constant 1.000000e+00 : f32
    %306 = vector.broadcast %cst_73 : f32 to vector<8x32xf32>
    %307 = arith.subf %305, %306 : vector<8x32xf32>
    %308 = vector.extract_strided_slice %300 {offsets = [0, 96], sizes = [8, 32], strides = [1, 1]} : vector<8x128xf32> to vector<8x32xf32>
    %309 = arith.mulf %302, %268 : vector<8x32xf32>
    %310 = arith.mulf %301, %307 : vector<8x32xf32>
    %311 = arith.addf %309, %310 : vector<8x32xf32>
    %312 = math.tanh %311 : vector<8x32xf32>
    %313 = arith.mulf %308, %312 : vector<8x32xf32>
    %cst_74 = arith.constant dense<0.000000e+00> : vector<8x128xf32>
    %314 = tpu.matmul %313, %2, %cst_74 {dimension_numbers = #tpu.dot_dimension_numbers<[1], [0], [0], [1], [0, 0, 1, 1], [], []>} : vector<8x32xf32>, vector<32x128xf32>, vector<8x128xf32> -> vector<8x128xf32>
    %315 = arith.addf %314, %6 : vector<8x128xf32>
    %316 = vector.extract_strided_slice %11 {offsets = [56, 0], sizes = [8, 128], strides = [1, 1]} : vector<64x128xf32> to vector<8x128xf32>
    %cst_75 = arith.constant dense<0.000000e+00> : vector<8x128xf32>
    %317 = tpu.matmul %293, %0, %cst_75 {dimension_numbers = #tpu.dot_dimension_numbers<[1], [0], [0], [1], [0, 0, 1, 1], [], []>} : vector<8x32xf32>, vector<32x128xf32>, vector<8x128xf32> -> vector<8x128xf32>
    %318 = arith.addf %316, %317 : vector<8x128xf32>
    %319 = arith.negf %318 : vector<8x128xf32>
    %320 = math.exp %319 : vector<8x128xf32>
    %cst_76 = arith.constant 1.000000e+00 : f32
    %321 = vector.broadcast %cst_76 : f32 to vector<8x128xf32>
    %322 = arith.addf %321, %320 : vector<8x128xf32>
    %323 = arith.divf %321, %322 : vector<8x128xf32>
    %324 = vector.extract_strided_slice %323 {offsets = [0, 0], sizes = [8, 32], strides = [1, 1]} : vector<8x128xf32> to vector<8x32xf32>
    %325 = vector.extract_strided_slice %323 {offsets = [0, 32], sizes = [8, 32], strides = [1, 1]} : vector<8x128xf32> to vector<8x32xf32>
    %326 = vector.extract_strided_slice %323 {offsets = [0, 64], sizes = [8, 32], strides = [1, 1]} : vector<8x128xf32> to vector<8x32xf32>
    %cst_77 = arith.constant 2.000000e+00 : f32
    %327 = vector.broadcast %cst_77 : f32 to vector<8x32xf32>
    %328 = arith.mulf %327, %326 : vector<8x32xf32>
    %cst_78 = arith.constant 1.000000e+00 : f32
    %329 = vector.broadcast %cst_78 : f32 to vector<8x32xf32>
    %330 = arith.subf %328, %329 : vector<8x32xf32>
    %331 = vector.extract_strided_slice %323 {offsets = [0, 96], sizes = [8, 32], strides = [1, 1]} : vector<8x128xf32> to vector<8x32xf32>
    %332 = arith.mulf %325, %291 : vector<8x32xf32>
    %333 = arith.mulf %324, %330 : vector<8x32xf32>
    %334 = arith.addf %332, %333 : vector<8x32xf32>
    %335 = math.tanh %334 : vector<8x32xf32>
    %336 = arith.mulf %331, %335 : vector<8x32xf32>
    %cst_79 = arith.constant dense<0.000000e+00> : vector<8x128xf32>
    %337 = tpu.matmul %336, %1, %cst_79 {dimension_numbers = #tpu.dot_dimension_numbers<[1], [0], [0], [1], [0, 0, 1, 1], [], []>} : vector<8x32xf32>, vector<32x128xf32>, vector<8x128xf32> -> vector<8x128xf32>
    %338 = arith.addf %315, %337 : vector<8x128xf32>
    %339 = arith.negf %338 : vector<8x128xf32>
    %340 = math.exp %339 : vector<8x128xf32>
    %cst_80 = arith.constant 1.000000e+00 : f32
    %341 = vector.broadcast %cst_80 : f32 to vector<8x128xf32>
    %342 = arith.addf %341, %340 : vector<8x128xf32>
    %343 = arith.divf %341, %342 : vector<8x128xf32>
    %344 = vector.extract_strided_slice %343 {offsets = [0, 0], sizes = [8, 32], strides = [1, 1]} : vector<8x128xf32> to vector<8x32xf32>
    %345 = vector.extract_strided_slice %343 {offsets = [0, 32], sizes = [8, 32], strides = [1, 1]} : vector<8x128xf32> to vector<8x32xf32>
    %346 = vector.extract_strided_slice %343 {offsets = [0, 64], sizes = [8, 32], strides = [1, 1]} : vector<8x128xf32> to vector<8x32xf32>
    %cst_81 = arith.constant 2.000000e+00 : f32
    %347 = vector.broadcast %cst_81 : f32 to vector<8x32xf32>
    %348 = arith.mulf %347, %346 : vector<8x32xf32>
    %cst_82 = arith.constant 1.000000e+00 : f32
    %349 = vector.broadcast %cst_82 : f32 to vector<8x32xf32>
    %350 = arith.subf %348, %349 : vector<8x32xf32>
    %351 = vector.extract_strided_slice %343 {offsets = [0, 96], sizes = [8, 32], strides = [1, 1]} : vector<8x128xf32> to vector<8x32xf32>
    %352 = arith.mulf %345, %311 : vector<8x32xf32>
    %353 = arith.mulf %344, %350 : vector<8x32xf32>
    %354 = arith.addf %352, %353 : vector<8x32xf32>
    %355 = math.tanh %354 : vector<8x32xf32>
    %356 = arith.mulf %351, %355 : vector<8x32xf32>
    %c96 = arith.constant 96 : index
    %c0_83 = arith.constant 0 : index
    %357 = vector.load %arg2[%c96, %c0_83] : memref<128x128xf32, #tpu.memory_space<vmem>>, vector<32x128xf32>
    %cst_84 = arith.constant dense<0.000000e+00> : vector<8x128xf32>
    %358 = tpu.matmul %356, %357, %cst_84 {dimension_numbers = #tpu.dot_dimension_numbers<[1], [0], [0], [1], [0, 0, 1, 1], [], []>} : vector<8x32xf32>, vector<32x128xf32>, vector<8x128xf32> -> vector<8x128xf32>
    %c2 = arith.constant 2 : index
    %c0_85 = arith.constant 0 : index
    %359 = vector.load %arg3[%c2, %c0_85] : memref<8x128xf32, #tpu.memory_space<vmem>>, vector<1x128xf32>
    %360 = vector.broadcast %359 : vector<1x128xf32> to vector<8x128xf32>
    %361 = arith.addf %358, %360 : vector<8x128xf32>
    %c0_86 = arith.constant 0 : index
    %c0_87 = arith.constant 0 : index
    %362 = vector.load %arg4[%c0_86, %c0_87] : memref<8x128xf32, #tpu.memory_space<vmem>>, vector<8x128xf32>
    tpu.vector_store %arg4[%c0_86, %c0_87], %361 {strides = array<i32>} : memref<8x128xf32, #tpu.memory_space<vmem>>, vector<8x128xf32>,
    return
  }
}

</mosaic_0001>

<bundles_post_ra>
// kernel: tpu_custom_call.1
= control target key start
LH: loop header
LB: loop body
LE: loop exit
PB: predicated region body
PF: predicated region fallthrough
CT: control target
= control target key end

     0   :  { %9 = vsyncpa [#allocation3], 0  ;;  %s3742_s0 = inlined_call_operand.vmem [shape: f32[64,16], index: 0, kind: input, shape index: {}]   ;;  %s3743_s1 = inlined_call_operand.vmem [shape: f32[16,128], index: 1, kind: input, shape index: {}]   ;;  %s3744_s2 = inlined_call_operand.hbm [shape: f32[128,128], index: 2, kind: input, shape index: {}]   ;;  %s3745_s3 = inlined_call_operand.vmem [shape: f32[8,128], index: 3, kind: input, shape index: {}]   ;;  %s3746_s4 = inlined_call_operand.hbm [shape: f32[8,128], index: 4, kind: output, shape index: {}]  }
   0x1   :  { %10 = vsyncpa [#allocation4], 0  ;;  %s3293_s15 = smov [#allocation2]   ;;  %s3245_s19 = scalar_lea.hbm %s3744_s2, 2048 }
   0x2   :  { %s20_s16 = sshll.u32 %s3293_s15, 4  ;;  %p3246_p0 = scmp.ne.s32.totalorder %s3744_s2, %s3245_s19  ;;  %s21_s16 = int_to_ptr.vmem [resolvable:$true] %s20_s16 }
   0x3   :  { %p3249_p1 = scmp.lt.u32.totalorder %s3245_s19, %s3744_s2 }
   0x5   :  { %p3251_p2 = pnand %p3249_p1, %p3246_p0 }
   0x7   :  { %3254 = shalt.err (!%p3251_p2)
}
   0x8   :  { %s3255_s24 = scalar_lea.vmem %s21_s16, 2048  ;;  %p3260_p4 = scmp.lt.s32.totalorder %s21_s16, %s21_s16 }
   0x9   :  { %p3256_p3 = scmp.ne.s32.totalorder %s21_s16, %s3255_s24  ;;  %p3261_p5 = scmp.lt.s32.totalorder %s3255_s24, %s3255_s24 }
   0xb   :  { %p3262_p6 = por %p3261_p5, %p3260_p4 }
   0xd   :  { %p3263_p7 = pnand %p3262_p6, %p3256_p3 }
   0xf   :  { %3266 = shalt.err (!%p3263_p7)
}
  0x10   :  { %s3294_s25 = smov 128   ;;  %s3295_s26 = smov 8  }
  0x11   :  { %26 = dma.hbm_to_vmem [thread:$0]  %s3744_s2, 2048, %s21_s16, [#allocation3], %s3294_s25, %s3294_s25, %s3295_s26  }
  0x12   :  { %3289 = dma.done.wait [#allocation3], 2048  }
  0x13   :  { %3290 = vsyncadd [#allocation3], 4294965248  ;;  %v3296_v0 = vmov 0.0|0.0   ;;  %vm3297_vm0 = vmmov 0   ;;  %v3298_v1 = vmov 0.0   ;;  %v40_v2 = vld [vmem:[#allocation2 + $0x40] sm:$0xff] }
  0x14   :  { %2965 = vmatprep.subr.bf16.mxu1 %v3296_v0  ;;  %2694 = vmatprep.mubr.msk.f32.mxu1 %vm3297_vm0, %v3298_v1  ;;  %v41_v3 = vld [vmem:[#allocation2 + $0x48] sm:$0xff]  ;;  %v42_v4 = vld [vmem:[#allocation2 + $0x50] sm:$0xff]  ;;  %vm64_vm1 = vcmask 130048   ;;  %v43_v6 = vld [vmem:[#allocation2 + $0x58] sm:$0xff]  ;;  %s3299_s11 = smov 64   ;;  %s3300_s12 = smov 32  }
  0x15   :  { %v3342_v5 = vpack.c.bf16 %v41_v3, %v40_v2  ;;  %v58_v7 = vld [vmem:[%s3743_s1] sm:$0xff]  ;;  %v59_v8 = vld [vmem:[%s3743_s1 + $0x8] sm:$0xff]  ;;  %v3354_v11 = vpack.c.bf16 %v43_v6, %v42_v4  ;;  %v32_v12 = vld [vmem:[#allocation2] sm:$0xff]  ;;  %vm194_vm2 = vcmask 261120   ;;  %s3301_s30 = smov [#allocation5]  }
  0x16   :  { %v2961_v9 = vpack.c.bf16 %v59_v8, %v58_v7  ;;  %v50_v10 = vld [vmem:[%s3742_s0] sm:$0xff]  ;;  %v33_v13 = vld [vmem:[#allocation2 + $0x8] sm:$0xff]  ;;  %v51_v14 = vld [vmem:[%s3742_s0 + $0x8] sm:$0xff]  ;;  %s2460_s2 = sshll.u32 %s3301_s30, 4  ;;  %s2461_s2 = int_to_ptr.vmem [resolvable:$true] %s2460_s2 }
  0x17   :  { %2967 = vmatpush3.bf16.msra.mxu1 %v3342_v5  ;;  %2674 = vmatprep.mubr.msk.f32.mxu0 %vm64_vm1, %v50_v10  ;;  %v3363_v15 = vpack.c.bf16 %v33_v13, %v32_v12  ;;  %v34_v16 = vld [vmem:[#allocation2 + $0x10] sm:$0xff]  ;;  %v35_v17 = vld [vmem:[#allocation2 + $0x18] sm:$0xff]  ;;  %v36_v37 = vld [vmem:[#allocation2 + $0x20] sm:$0xff]  ;;  %s3267_s5 = scalar_lea.vmem %s2461_s2, 128  ;;  %p3272_p9 = scmp.lt.s32.totalorder %s2461_s2, %s2461_s2 }
  0x18   :  { %2968 = vmatprep.subr.bf16.mxu1 %v3296_v0  ;;  %2962 = vmatprep.subr.bf16.mxu0 %v2961_v9  ;;  %v3371_v18 = vpack.c.bf16 %v35_v17, %v34_v16  ;;  %v3388_v21 = vld [vmem:[%s3745_s3] ss:$0 sm:$0xff]  ;;  %v37_v38 = vld [vmem:[#allocation2 + $0x28] sm:$0xff]  ;;  %v39_v41 = vld [vmem:[#allocation2 + $0x38] sm:$0xff]  ;;  %p3268_p8 = scmp.ne.s32.totalorder %s2461_s2, %s3267_s5  ;;  %p3273_p10 = scmp.lt.s32.totalorder %s3267_s5, %s3267_s5 }
  0x19   :  { %2964 = vmatpush3.bf16.msra.mxu0 %v2961_v9  ;;  %v38_v39 = vld [vmem:[#allocation2 + $0x30] sm:$0xff]  ;;  %v3396_v40 = vpack.c.bf16 %v37_v38, %v36_v37  ;;  %v52_v62 = vld [vmem:[%s3742_s0 + $0x10] sm:$0xff]  ;;  %v53_v63 = vld [vmem:[%s3742_s0 + $0x18] sm:$0xff] }
  0x1a   :  { %2983 = vmatprep.subr.bf16.mxu0 %v3296_v0  ;;  %v3399_v42 = vpack.c.bf16 %v39_v41, %v38_v39  ;;  %v3416_v47 = vld [vmem:[%s3745_s3 + $0x1] ss:$0 sm:$0xff]  ;;  %v55_v3 = vld [vmem:[%s3742_s0 + $0x28] sm:$0xff]  ;;  %v56_v4 = vld [vmem:[%s3742_s0 + $0x30] sm:$0xff]  ;;  %p3274_p11 = por %p3273_p10, %p3272_p9 }
  0x1b   :  { %2970 = vmatpush3.bf16.msra.mxu1 %v3354_v11  ;;  %v54_v2 = vld [vmem:[%s3742_s0 + $0x20] sm:$0xff]  ;;  %v57_v6 = vld [vmem:[%s3742_s0 + $0x38] sm:$0xff] }
  0x1c   :  { %2971 = vmatprep.subr.bf16.mxu1 %v3296_v0  ;;  %2675 = vmatmul.mubr.msk.f32.vlgmr.msra.gmra.mrb[0].mxu0 %vm64_vm1, %v51_v14  ;;  %p3275_p12 = pnand %p3274_p11, %p3268_p8 }
  0x1d   :  { %2985 = vmatpush3.bf16.msra.mxu0 %v3342_v5  ;;  %2677 = vmatprep.mubr.msk.f32.mxu0 %vm64_vm1, %v52_v62 }
  0x1e   :  { %2695 = vmatmul.mubr.f32.vlgmr.msra.gmra.mrb[0].mxu1 %v3298_v1  ;;  %2986 = vmatprep.subr.bf16.mxu0 %v3296_v0 }
  0x1f   :  { %2973 = vmatpush3.bf16.msra.mxu1 %v3363_v15  ;;  %2705 = vmatprep.mubr.msk.f32.mxu1 %vm3297_vm0, %v3298_v1 }
  0x20   :  { %2974 = vmatprep.subr.bf16.mxu1 %v3296_v0  ;;  %2678 = vmatmul.mubr.msk.f32.gmra.mrb[2].mxu0 %vm64_vm1, %v53_v63 }
  0x21   :  { %2988 = vmatpush3.bf16.msra.mxu0 %v3354_v11  ;;  %2680 = vmatprep.mubr.msk.f32.mxu0 %vm64_vm1, %v54_v2 }
  0x22   :  { %2989 = vmatprep.subr.bf16.mxu0 %v3296_v0 }
  0x23   :  { %2976 = vmatpush3.bf16.msra.mxu1 %v3371_v18 }
  0x24   :  { %2977 = vmatprep.subr.bf16.mxu1 %v3296_v0  ;;  %2681 = vmatmul.mubr.msk.f32.gmra.mrb[4].mxu0 %vm64_vm1, %v55_v3 }
  0x25   :  { %2683 = vmatprep.mubr.msk.f32.mxu0 %vm64_vm1, %v56_v4 }
  0x26   :  { %2706 = vmatmul.mubr.f32.vlgmr.msra.gmra.mrb[2].mxu1 %v3298_v1 }
  0x27   :  { %2716 = vmatprep.mubr.msk.f32.mxu1 %vm3297_vm0, %v3298_v1  ;;  %2979 = vmatpush3.bf16.msra.mxu1 %v3396_v40 }
  0x28   :  { %2980 = vmatprep.subr.bf16.mxu1 %v3296_v0  ;;  %2684 = vmatmul.mubr.msk.f32.gmra.mrb[6].mxu0 %vm64_vm1, %v57_v6 }
  0x29   :  { %2727 = vmatprep.mubr.msk.f32.mxu0 %vm3297_vm0, %v3298_v1 }
  0x2b   :  { %2982 = vmatpush3.bf16.msra.mxu1 %v3399_v42 }
  0x2c   :  { %3001 = vmatprep.subr.bf16.mxu1 %v3296_v0 }
  0xef   :  { %v3383_v19 = vpop.f32.mrb[0].mxu0 }
  0xf0   :  { %v155_v20 = vpop.f32.mrb[1].mxu0 }
  0xf1   :  { %v156_v22 = vadd.f32 %v3388_v21, %v155_v20 }
  0xf3   :  { %v3452_v10 = vpop.f32.mrb[2].mxu0 }
  0xf4   :  { %v3454_v12 = vpop.f32.mrb[3].mxu0 }
  0xf7   :  { %v3456_v13 = vpop.f32.mrb[4].mxu0 }
  0xf8   :  { %v3458_v14 = vpop.f32.mrb[5].mxu0 }
  0xf9   :  { %v334_v23 = vpop.f32.mrb[2].mxu1 }
  0xfa   :  { %v338_v24 = vadd.f32 %v334_v23, %v156_v22  ;;  %v2707_v25 = vpop.f32.mrb[3].mxu1  ;;  %v161_v22 = vadd.f32 %v3383_v19, %v3388_v21 }
  0xfb   :  { %v3460_v16 = vpop.f32.mrb[6].mxu0 }
  0xfc   :  { %v2479_v26 = vmul.f32 -1.442695, %v338_v24  ;;  %v3462_v17 = vpop.f32.mrb[7].mxu0 }
  0xfe   :  { %3148 = vpow2.f32 %v2479_v26 }
 0x108   :  { %v3149_v27 = vpop.eup %3148 }
 0x109   :  { %v342_v28 = vadd.f32 1.0, %v3149_v27 }
 0x10b   :  { %3150 = vrcp.f32 %v342_v28 }
 0x115   :  { %v3151_v29 = vpop.eup %3150 }
 0x116   :  { %v345_v30 = vmul.f32 2.0, %v3151_v29  ;;  %v347_v34 = vmul.f32 0.0, %v3151_v29 }
 0x118   :  { %v2480_v31 = vadd.f32 -1.0, %v345_v30 }
 0x11a   :  { %349 = vrot.lane.b32.xlu0 %v2480_v31, %s3299_s11 }
 0x18c   :  { %v350_v32 = vpop.permute.xlu0 %349 }
 0x18d   :  { %v352_v33 = vmul.f32 %v3151_v29, %v350_v32 }
 0x18f   :  { %354 = vrot.lane.b32.xlu0 %v352_v33, %s3300_s12 }
 0x201   :  { %v355_v35 = vpop.permute.xlu0 %354 }
 0x202   :  { %v3393_v36 = vadd.f32 %v355_v35, %v347_v34 }
 0x204   :  { %3152 = vtanh.f32 %v3393_v36 }
 0x20e   :  { %v3153_v43 = vpop.eup %3152 }
 0x20f   :  { %360 = vrot.lane.b32.xlu1 %v3153_v43, %s3299_s11 }
 0x281   :  { %v361_v44 = vpop.permute.xlu1 %360 }
 0x282   :  { %v363_v45 = vmul.f32 %v3151_v29, %v361_v44 }
 0x284   :  { %365 = vrot.lane.b32.xlu1 %v363_v45, %s3300_s12 }
 0x2f6   :  { %v366_v46 = vpop.permute.xlu1 %365 }
 0x2f7   :  { %2717 = vmatmul.mubr.msk.f32.vlgmr.msra.gmra.mrb[0].mxu1 %vm194_vm2, %v366_v46 }
 0x2f8   :  { %3003 = vmatpush3.bf16.msra.mxu1 %v3342_v5  ;;  %2760 = vmatprep.mubr.msk.f32.mxu1 %vm3297_vm0, %v3298_v1 }
 0x2f9   :  { %3004 = vmatprep.subr.bf16.mxu1 %v3296_v0 }
 0x2fc   :  { %3006 = vmatpush3.bf16.msra.mxu1 %v3354_v11 }
 0x2fd   :  { %3007 = vmatprep.subr.bf16.mxu1 %v3296_v0 }
 0x3ca   :  { %v435_v48 = vpop.f32.mrb[0].mxu1 }
 0x3cb   :  { %v3115_v49 = vadd.f32 %v3416_v47, %v435_v48  ;;  %v2718_v50 = vpop.f32.mrb[1].mxu1 }
 0x3cd   :  { %v2482_v51 = vmul.f32 -1.442695, %v3115_v49 }
 0x3cf   :  { %3154 = vpow2.f32 %v2482_v51 }
 0x3d9   :  { %v3155_v52 = vpop.eup %3154 }
 0x3da   :  { %v443_v53 = vadd.f32 1.0, %v3155_v52 }
 0x3dc   :  { %3156 = vrcp.f32 %v443_v53 }
 0x3e6   :  { %v3157_v54 = vpop.eup %3156 }
 0x3e7   :  { %v446_v55 = vmul.f32 2.0, %v3157_v54  ;;  %v448_v59 = vmul.f32 0.0, %v3157_v54 }
 0x3e9   :  { %v2483_v56 = vadd.f32 -1.0, %v446_v55 }
 0x3eb   :  { %450 = vrot.lane.b32.xlu0 %v2483_v56, %s3299_s11 }
 0x45d   :  { %v451_v57 = vpop.permute.xlu0 %450 }
 0x45e   :  { %v453_v58 = vmul.f32 %v3157_v54, %v451_v57 }
 0x460   :  { %455 = vrot.lane.b32.xlu1 %v453_v58, %s3300_s12 }
 0x4d2   :  { %v456_v60 = vpop.permute.xlu1 %455 }
 0x4d3   :  { %v3421_v61 = vadd.f32 %v456_v60, %v448_v59 }
 0x4d5   :  { %3158 = vtanh.f32 %v3421_v61 }
 0x4df   :  { %v3159_v7 = vpop.eup %3158 }
 0x4e0   :  { %461 = vrot.lane.b32.xlu0 %v3159_v7, %s3299_s11 }
 0x552   :  { %v462_v8 = vpop.permute.xlu0 %461 }
 0x553   :  { %v464_v9 = vmul.f32 %v3157_v54, %v462_v8 }
 0x555   :  { %466 = vrot.lane.b32.xlu1 %v464_v9, %s3300_s12 }
 0x5c7   :  { %v467_v20 = vpop.permute.xlu1 %466 }
 0x5c8   :  { %2728 = vmatmul.mubr.msk.f32.vlgmr.msra.gmra.mrb[8].mxu0 %vm194_vm2, %v467_v20 }
 0x5c9   :  { %2991 = vmatpush3.bf16.msra.mxu0 %v3363_v15  ;;  %2738 = vmatprep.mubr.msk.f32.mxu0 %vm3297_vm0, %v3298_v1 }
 0x5ca   :  { %2992 = vmatprep.subr.bf16.mxu0 %v3296_v0 }
 0x5cd   :  { %2994 = vmatpush3.bf16.msra.mxu0 %v3371_v18 }
 0x5ce   :  { %2995 = vmatprep.subr.bf16.mxu0 %v3296_v0 }
 0x5d0   :  { %2739 = vmatmul.mubr.msk.f32.vlgmr.msra.gmra.mrb[10].mxu0 %vm194_vm2, %v366_v46 }
 0x5d1   :  { %2997 = vmatpush3.bf16.msra.mxu0 %v3396_v40  ;;  %2749 = vmatprep.mubr.msk.f32.mxu0 %vm3297_vm0, %v3298_v1 }
 0x5d2   :  { %2998 = vmatprep.subr.bf16.mxu0 %v3296_v0 }
 0x5d5   :  { %3000 = vmatpush3.bf16.msra.mxu0 %v3399_v42 }
 0x5d6   :  { %3019 = vmatprep.subr.bf16.mxu0 %v3296_v0 }
 0x6a3   :  { %v606_v23 = vpop.f32.mrb[10].mxu0 }
 0x6a4   :  { %v610_v24 = vadd.f32 %v606_v23, %v161_v22  ;;  %v2740_v25 = vpop.f32.mrb[11].mxu0 }
 0x6a6   :  { %v2486_v26 = vmul.f32 -1.442695, %v610_v24 }
 0x6a8   :  { %3160 = vpow2.f32 %v2486_v26 }
 0x6b2   :  { %v3161_v27 = vpop.eup %3160 }
 0x6b3   :  { %v614_v28 = vadd.f32 1.0, %v3161_v27 }
 0x6b5   :  { %3162 = vrcp.f32 %v614_v28 }
 0x6bf   :  { %v3163_v29 = vpop.eup %3162 }
 0x6c0   :  { %v617_v30 = vmul.f32 2.0, %v3163_v29  ;;  %v619_v34 = vmul.f32 %v3163_v29, %v3393_v36 }
 0x6c2   :  { %v2487_v31 = vadd.f32 -1.0, %v617_v30 }
 0x6c4   :  { %621 = vrot.lane.b32.xlu0 %v2487_v31, %s3299_s11 }
 0x736   :  { %v622_v32 = vpop.permute.xlu0 %621 }
 0x737   :  { %v624_v33 = vmul.f32 %v3163_v29, %v622_v32 }
 0x739   :  { %626 = vrot.lane.b32.xlu1 %v624_v33, %s3300_s12 }
 0x7ab   :  { %v627_v19 = vpop.permute.xlu1 %626 }
 0x7ac   :  { %v3483_v35 = vadd.f32 %v627_v19, %v619_v34 }
 0x7ae   :  { %3164 = vtanh.f32 %v3483_v35 }
 0x7b8   :  { %v3165_v37 = vpop.eup %3164 }
 0x7b9   :  { %632 = vrot.lane.b32.xlu0 %v3165_v37, %s3299_s11 }
 0x82b   :  { %v633_v38 = vpop.permute.xlu0 %632 }
 0x82c   :  { %v635_v39 = vmul.f32 %v3163_v29, %v633_v38 }
 0x82e   :  { %637 = vrot.lane.b32.xlu1 %v635_v39, %s3300_s12 }
 0x8a0   :  { %v638_v41 = vpop.permute.xlu1 %637 }
 0x8a1   :  { %2750 = vmatmul.mubr.msk.f32.vlgmr.msra.gmra.mrb[8].mxu0 %vm194_vm2, %v638_v41 }
 0x8a2   :  { %3021 = vmatpush3.bf16.msra.mxu0 %v3342_v5  ;;  %2793 = vmatprep.mubr.msk.f32.mxu0 %vm3297_vm0, %v3298_v1 }
 0x8a3   :  { %3022 = vmatprep.subr.bf16.mxu0 %v3296_v0 }
 0x8a6   :  { %3024 = vmatpush3.bf16.msra.mxu0 %v3354_v11 }
 0x8a7   :  { %3025 = vmatprep.subr.bf16.mxu0 %v3296_v0 }
 0x974   :  { %v707_v36 = vpop.f32.mrb[8].mxu0 }
 0x975   :  { %v3116_v43 = vadd.f32 %v3416_v47, %v707_v36  ;;  %v2751_v44 = vpop.f32.mrb[9].mxu0 }
 0x977   :  { %v2489_v45 = vmul.f32 -1.442695, %v3116_v43 }
 0x979   :  { %3166 = vpow2.f32 %v2489_v45 }
 0x983   :  { %v3167_v46 = vpop.eup %3166 }
 0x984   :  { %v715_v48 = vadd.f32 1.0, %v3167_v46 }
 0x986   :  { %3168 = vrcp.f32 %v715_v48 }
 0x990   :  { %v3169_v49 = vpop.eup %3168 }
 0x991   :  { %v718_v50 = vmul.f32 2.0, %v3169_v49  ;;  %v720_v54 = vmul.f32 %v3169_v49, %v3421_v61  ;;  %v166_v61 = vadd.f32 %v3388_v21, %v3454_v12 }
 0x993   :  { %v2490_v51 = vadd.f32 -1.0, %v718_v50 }
 0x995   :  { %722 = vrot.lane.b32.xlu0 %v2490_v51, %s3299_s11 }
 0xa07   :  { %v723_v52 = vpop.permute.xlu0 %722 }
 0xa08   :  { %v725_v53 = vmul.f32 %v3169_v49, %v723_v52 }
 0xa0a   :  { %727 = vrot.lane.b32.xlu1 %v725_v53, %s3300_s12 }
 0xa7c   :  { %v728_v55 = vpop.permute.xlu1 %727 }
 0xa7d   :  { %v3499_v56 = vadd.f32 %v728_v55, %v720_v54 }
 0xa7f   :  { %3170 = vtanh.f32 %v3499_v56 }
 0xa89   :  { %v3171_v57 = vpop.eup %3170 }
 0xa8a   :  { %733 = vrot.lane.b32.xlu0 %v3171_v57, %s3299_s11 }
 0xafc   :  { %v734_v58 = vpop.permute.xlu0 %733 }
 0xafd   :  { %v736_v59 = vmul.f32 %v3169_v49, %v734_v58  ;;  %v171_v49 = vadd.f32 %v3452_v10, %v3388_v21 }
 0xaff   :  { %738 = vrot.lane.b32.xlu1 %v736_v59, %s3300_s12 }
 0xb71   :  { %v739_v60 = vpop.permute.xlu1 %738 }
 0xb72   :  { %2761 = vmatmul.mubr.msk.f32.vlgmr.msra.gmra.mrb[4].mxu1 %vm194_vm2, %v739_v60 }
 0xb73   :  { %3009 = vmatpush3.bf16.msra.mxu1 %v3363_v15  ;;  %2771 = vmatprep.mubr.msk.f32.mxu1 %vm3297_vm0, %v3298_v1 }
 0xb74   :  { %3010 = vmatprep.subr.bf16.mxu1 %v3296_v0 }
 0xb77   :  { %3012 = vmatpush3.bf16.msra.mxu1 %v3371_v18 }
 0xb78   :  { %3013 = vmatprep.subr.bf16.mxu1 %v3296_v0 }
 0xb7a   :  { %2772 = vmatmul.mubr.msk.f32.vlgmr.msra.gmra.mrb[6].mxu1 %vm194_vm2, %v638_v41 }
 0xb7b   :  { %3015 = vmatpush3.bf16.msra.mxu1 %v3396_v40  ;;  %2782 = vmatprep.mubr.msk.f32.mxu1 %vm3297_vm0, %v3298_v1 }
 0xb7c   :  { %3016 = vmatprep.subr.bf16.mxu1 %v3296_v0 }
 0xb7f   :  { %3018 = vmatpush3.bf16.msra.mxu1 %v3399_v42 }
 0xb80   :  { %3037 = vmatprep.subr.bf16.mxu1 %v3296_v0 }
 0xc4d   :  { %v878_v62 = vpop.f32.mrb[6].mxu1 }
 0xc4e   :  { %v882_v63 = vadd.f32 %v878_v62, %v166_v61  ;;  %v2773_v2 = vpop.f32.mrb[7].mxu1 }
 0xc50   :  { %v2493_v3 = vmul.f32 -1.442695, %v882_v63 }
 0xc52   :  { %3172 = vpow2.f32 %v2493_v3 }
 0xc5c   :  { %v3173_v4 = vpop.eup %3172 }
 0xc5d   :  { %v886_v6 = vadd.f32 1.0, %v3173_v4 }
 0xc5f   :  { %3174 = vrcp.f32 %v886_v6 }
 0xc69   :  { %v3175_v7 = vpop.eup %3174 }
 0xc6a   :  { %v889_v8 = vmul.f32 2.0, %v3175_v7  ;;  %v891_v23 = vmul.f32 %v3175_v7, %v3483_v35 }
 0xc6c   :  { %v2494_v9 = vadd.f32 -1.0, %v889_v8 }
 0xc6e   :  { %893 = vrot.lane.b32.xlu0 %v2494_v9, %s3299_s11 }
 0xce0   :  { %v894_v20 = vpop.permute.xlu0 %893 }
 0xce1   :  { %v896_v22 = vmul.f32 %v3175_v7, %v894_v20 }
 0xce3   :  { %898 = vrot.lane.b32.xlu1 %v896_v22, %s3300_s12 }
 0xd55   :  { %v899_v12 = vpop.permute.xlu1 %898 }
 0xd56   :  { %v3523_v24 = vadd.f32 %v899_v12, %v891_v23 }
 0xd58   :  { %3176 = vtanh.f32 %v3523_v24 }
 0xd62   :  { %v3177_v25 = vpop.eup %3176 }
 0xd63   :  { %904 = vrot.lane.b32.xlu0 %v3177_v25, %s3299_s11 }
 0xdd5   :  { %v905_v26 = vpop.permute.xlu0 %904 }
 0xdd6   :  { %v907_v27 = vmul.f32 %v3175_v7, %v905_v26 }
 0xdd8   :  { %909 = vrot.lane.b32.xlu1 %v907_v27, %s3300_s12 }
 0xe4a   :  { %v910_v28 = vpop.permute.xlu1 %909 }
 0xe4b   :  { %2783 = vmatmul.mubr.msk.f32.vlgmr.msra.gmra.mrb[4].mxu1 %vm194_vm2, %v910_v28 }
 0xe4c   :  { %3039 = vmatpush3.bf16.msra.mxu1 %v3342_v5  ;;  %2826 = vmatprep.mubr.msk.f32.mxu1 %vm3297_vm0, %v3298_v1 }
 0xe4d   :  { %3040 = vmatprep.subr.bf16.mxu1 %v3296_v0 }
 0xe50   :  { %3042 = vmatpush3.bf16.msra.mxu1 %v3354_v11 }
 0xe51   :  { %3043 = vmatprep.subr.bf16.mxu1 %v3296_v0 }
 0xf1e   :  { %v979_v29 = vpop.f32.mrb[4].mxu1 }
 0xf1f   :  { %v3117_v30 = vadd.f32 %v3416_v47, %v979_v29  ;;  %v2784_v31 = vpop.f32.mrb[5].mxu1 }
 0xf21   :  { %v2496_v32 = vmul.f32 -1.442695, %v3117_v30 }
 0xf23   :  { %3178 = vpow2.f32 %v2496_v32 }
 0xf2d   :  { %v3179_v33 = vpop.eup %3178 }
 0xf2e   :  { %v987_v34 = vadd.f32 1.0, %v3179_v33 }
 0xf30   :  { %3180 = vrcp.f32 %v987_v34  ;;  %v176_v34 = vadd.f32 %v3388_v21, %v3458_v14 }
 0xf3a   :  { %v3181_v19 = vpop.eup %3180 }
 0xf3b   :  { %v990_v35 = vmul.f32 2.0, %v3181_v19  ;;  %v992_v41 = vmul.f32 %v3181_v19, %v3499_v56 }
 0xf3d   :  { %v2497_v37 = vadd.f32 -1.0, %v990_v35 }
 0xf3f   :  { %994 = vrot.lane.b32.xlu0 %v2497_v37, %s3299_s11 }
 0xfb1   :  { %v995_v38 = vpop.permute.xlu0 %994 }
 0xfb2   :  { %v997_v39 = vmul.f32 %v3181_v19, %v995_v38 }
 0xfb4   :  { %999 = vrot.lane.b32.xlu1 %v997_v39, %s3300_s12 }
0x1026   :  { %v1000_v36 = vpop.permute.xlu1 %999 }
0x1027   :  { %v3539_v43 = vadd.f32 %v1000_v36, %v992_v41 }
0x1029   :  { %3182 = vtanh.f32 %v3539_v43 }
0x1033   :  { %v3183_v44 = vpop.eup %3182 }
0x1034   :  { %1005 = vrot.lane.b32.xlu0 %v3183_v44, %s3299_s11 }
0x10a6   :  { %v1006_v45 = vpop.permute.xlu0 %1005 }
0x10a7   :  { %v1008_v46 = vmul.f32 %v3181_v19, %v1006_v45 }
0x10a9   :  { %1010 = vrot.lane.b32.xlu1 %v1008_v46, %s3300_s12 }
0x111b   :  { %v1011_v48 = vpop.permute.xlu1 %1010 }
0x111c   :  { %2794 = vmatmul.mubr.msk.f32.vlgmr.msra.gmra.mrb[12].mxu0 %vm194_vm2, %v1011_v48 }
0x111d   :  { %3027 = vmatpush3.bf16.msra.mxu0 %v3363_v15  ;;  %2804 = vmatprep.mubr.msk.f32.mxu0 %vm3297_vm0, %v3298_v1 }
0x111e   :  { %3028 = vmatprep.subr.bf16.mxu0 %v3296_v0 }
0x1121   :  { %3030 = vmatpush3.bf16.msra.mxu0 %v3371_v18 }
0x1122   :  { %3031 = vmatprep.subr.bf16.mxu0 %v3296_v0 }
0x1124   :  { %2805 = vmatmul.mubr.msk.f32.vlgmr.msra.gmra.mrb[14].mxu0 %vm194_vm2, %v910_v28 }
0x1125   :  { %3033 = vmatpush3.bf16.msra.mxu0 %v3396_v40  ;;  %2815 = vmatprep.mubr.msk.f32.mxu0 %vm3297_vm0, %v3298_v1 }
0x1126   :  { %3034 = vmatprep.subr.bf16.mxu0 %v3296_v0 }
0x1129   :  { %3036 = vmatpush3.bf16.msra.mxu0 %v3399_v42 }
0x112a   :  { %3055 = vmatprep.subr.bf16.mxu0 %v3296_v0 }
0x11f7   :  { %v1150_v50 = vpop.f32.mrb[14].mxu0 }
0x11f8   :  { %v1154_v51 = vadd.f32 %v1150_v50, %v171_v49  ;;  %v2806_v52 = vpop.f32.mrb[15].mxu0 }
0x11fa   :  { %v2500_v53 = vmul.f32 -1.442695, %v1154_v51 }
0x11fc   :  { %3184 = vpow2.f32 %v2500_v53 }
0x1206   :  { %v3185_v54 = vpop.eup %3184 }
0x1207   :  { %v1158_v55 = vadd.f32 1.0, %v3185_v54 }
0x1209   :  { %3186 = vrcp.f32 %v1158_v55 }
0x1213   :  { %v3187_v56 = vpop.eup %3186 }
0x1214   :  { %v1161_v57 = vmul.f32 2.0, %v3187_v56  ;;  %v1163_v61 = vmul.f32 %v3187_v56, %v3523_v24 }
0x1216   :  { %v2501_v58 = vadd.f32 -1.0, %v1161_v57 }
0x1218   :  { %1165 = vrot.lane.b32.xlu0 %v2501_v58, %s3299_s11 }
0x128a   :  { %v1166_v59 = vpop.permute.xlu0 %1165 }
0x128b   :  { %v1168_v60 = vmul.f32 %v3187_v56, %v1166_v59 }
0x128d   :  { %1170 = vrot.lane.b32.xlu1 %v1168_v60, %s3300_s12 }
0x12ff   :  { %v1171_v10 = vpop.permute.xlu1 %1170 }
0x1300   :  { %v3563_v62 = vadd.f32 %v1171_v10, %v1163_v61 }
0x1302   :  { %3188 = vtanh.f32 %v3563_v62 }
0x130c   :  { %v3189_v63 = vpop.eup %3188 }
0x130d   :  { %1176 = vrot.lane.b32.xlu0 %v3189_v63, %s3299_s11 }
0x137f   :  { %v1177_v2 = vpop.permute.xlu0 %1176 }
0x1380   :  { %v1179_v3 = vmul.f32 %v3187_v56, %v1177_v2 }
0x1382   :  { %1181 = vrot.lane.b32.xlu1 %v1179_v3, %s3300_s12 }
0x13f4   :  { %v1182_v4 = vpop.permute.xlu1 %1181 }
0x13f5   :  { %2816 = vmatmul.mubr.msk.f32.vlgmr.msra.gmra.mrb[12].mxu0 %vm194_vm2, %v1182_v4 }
0x13f6   :  { %3057 = vmatpush3.bf16.msra.mxu0 %v3342_v5  ;;  %2859 = vmatprep.mubr.msk.f32.mxu0 %vm3297_vm0, %v3298_v1 }
0x13f7   :  { %3058 = vmatprep.subr.bf16.mxu0 %v3296_v0 }
0x13fa   :  { %3060 = vmatpush3.bf16.msra.mxu0 %v3354_v11 }
0x13fb   :  { %3061 = vmatprep.subr.bf16.mxu0 %v3296_v0 }
0x14c8   :  { %v1251_v6 = vpop.f32.mrb[12].mxu0 }
0x14c9   :  { %v3118_v7 = vadd.f32 %v3416_v47, %v1251_v6  ;;  %v2817_v8 = vpop.f32.mrb[13].mxu0 }
0x14cb   :  { %v2503_v9 = vmul.f32 -1.442695, %v3118_v7 }
0x14cd   :  { %3190 = vpow2.f32 %v2503_v9 }
0x14d7   :  { %v3191_v20 = vpop.eup %3190 }
0x14d8   :  { %v1259_v22 = vadd.f32 1.0, %v3191_v20  ;;  %v181_v20 = vadd.f32 %v3456_v13, %v3388_v21 }
0x14da   :  { %3192 = vrcp.f32 %v1259_v22 }
0x14e4   :  { %v3193_v23 = vpop.eup %3192 }
0x14e5   :  { %v1262_v12 = vmul.f32 2.0, %v3193_v23  ;;  %v1264_v27 = vmul.f32 %v3193_v23, %v3539_v43 }
0x14e7   :  { %v2504_v24 = vadd.f32 -1.0, %v1262_v12 }
0x14e9   :  { %1266 = vrot.lane.b32.xlu0 %v2504_v24, %s3299_s11 }
0x155b   :  { %v1267_v25 = vpop.permute.xlu0 %1266 }
0x155c   :  { %v1269_v26 = vmul.f32 %v3193_v23, %v1267_v25 }
0x155e   :  { %1271 = vrot.lane.b32.xlu1 %v1269_v26, %s3300_s12 }
0x15d0   :  { %v1272_v28 = vpop.permute.xlu1 %1271 }
0x15d1   :  { %v3579_v29 = vadd.f32 %v1272_v28, %v1264_v27 }
0x15d3   :  { %3194 = vtanh.f32 %v3579_v29 }
0x15dd   :  { %v3195_v30 = vpop.eup %3194 }
0x15de   :  { %1277 = vrot.lane.b32.xlu0 %v3195_v30, %s3299_s11 }
0x1650   :  { %v1278_v31 = vpop.permute.xlu0 %1277 }
0x1651   :  { %v1280_v32 = vmul.f32 %v3193_v23, %v1278_v31 }
0x1653   :  { %1282 = vrot.lane.b32.xlu1 %v1280_v32, %s3300_s12 }
0x16c5   :  { %v1283_v33 = vpop.permute.xlu1 %1282 }
0x16c6   :  { %2827 = vmatmul.mubr.msk.f32.vlgmr.msra.gmra.mrb[8].mxu1 %vm194_vm2, %v1283_v33 }
0x16c7   :  { %3045 = vmatpush3.bf16.msra.mxu1 %v3363_v15  ;;  %2837 = vmatprep.mubr.msk.f32.mxu1 %vm3297_vm0, %v3298_v1 }
0x16c8   :  { %3046 = vmatprep.subr.bf16.mxu1 %v3296_v0 }
0x16cb   :  { %3048 = vmatpush3.bf16.msra.mxu1 %v3371_v18 }
0x16cc   :  { %3049 = vmatprep.subr.bf16.mxu1 %v3296_v0 }
0x16ce   :  { %2838 = vmatmul.mubr.msk.f32.vlgmr.msra.gmra.mrb[10].mxu1 %vm194_vm2, %v1182_v4 }
0x16cf   :  { %3051 = vmatpush3.bf16.msra.mxu1 %v3396_v40  ;;  %2848 = vmatprep.mubr.msk.f32.mxu1 %vm3297_vm0, %v3298_v1 }
0x16d0   :  { %3052 = vmatprep.subr.bf16.mxu1 %v3296_v0 }
0x16d3   :  { %3054 = vmatpush3.bf16.msra.mxu1 %v3399_v42 }
0x16d4   :  { %3073 = vmatprep.subr.bf16.mxu1 %v3296_v0 }
0x17a1   :  { %v1422_v19 = vpop.f32.mrb[10].mxu1 }
0x17a2   :  { %v1426_v35 = vadd.f32 %v1422_v19, %v176_v34  ;;  %v2839_v37 = vpop.f32.mrb[11].mxu1 }
0x17a4   :  { %v2507_v38 = vmul.f32 -1.442695, %v1426_v35 }
0x17a6   :  { %3196 = vpow2.f32 %v2507_v38 }
0x17b0   :  { %v3197_v39 = vpop.eup %3196 }
0x17b1   :  { %v1430_v41 = vadd.f32 1.0, %v3197_v39 }
0x17b3   :  { %3198 = vrcp.f32 %v1430_v41 }
0x17bd   :  { %v3199_v36 = vpop.eup %3198 }
0x17be   :  { %v1433_v43 = vmul.f32 2.0, %v3199_v36  ;;  %v1435_v48 = vmul.f32 %v3199_v36, %v3563_v62 }
0x17c0   :  { %v2508_v44 = vadd.f32 -1.0, %v1433_v43 }
0x17c2   :  { %1437 = vrot.lane.b32.xlu0 %v2508_v44, %s3299_s11 }
0x1834   :  { %v1438_v45 = vpop.permute.xlu0 %1437 }
0x1835   :  { %v1440_v46 = vmul.f32 %v3199_v36, %v1438_v45 }
0x1837   :  { %1442 = vrot.lane.b32.xlu1 %v1440_v46, %s3300_s12 }
0x18a9   :  { %v1443_v14 = vpop.permute.xlu1 %1442 }
0x18aa   :  { %v3603_v49 = vadd.f32 %v1443_v14, %v1435_v48 }
0x18ac   :  { %3200 = vtanh.f32 %v3603_v49 }
0x18b6   :  { %v3201_v50 = vpop.eup %3200 }
0x18b7   :  { %1448 = vrot.lane.b32.xlu0 %v3201_v50, %s3299_s11 }
0x1929   :  { %v1449_v51 = vpop.permute.xlu0 %1448 }
0x192a   :  { %v1451_v52 = vmul.f32 %v3199_v36, %v1449_v51 }
0x192c   :  { %1453 = vrot.lane.b32.xlu1 %v1451_v52, %s3300_s12 }
0x199e   :  { %v1454_v53 = vpop.permute.xlu1 %1453 }
0x199f   :  { %2849 = vmatmul.mubr.msk.f32.vlgmr.msra.gmra.mrb[8].mxu1 %vm194_vm2, %v1454_v53 }
0x19a0   :  { %3075 = vmatpush3.bf16.msra.mxu1 %v3342_v5  ;;  %2892 = vmatprep.mubr.msk.f32.mxu1 %vm3297_vm0, %v3298_v1 }
0x19a1   :  { %3076 = vmatprep.subr.bf16.mxu1 %v3296_v0 }
0x19a4   :  { %3078 = vmatpush3.bf16.msra.mxu1 %v3354_v11 }
0x19a5   :  { %3079 = vmatprep.subr.bf16.mxu1 %v3296_v0 }
0x1a72   :  { %v1523_v54 = vpop.f32.mrb[8].mxu1 }
0x1a73   :  { %v3119_v55 = vadd.f32 %v3416_v47, %v1523_v54  ;;  %v2850_v56 = vpop.f32.mrb[9].mxu1 }
0x1a75   :  { %v2510_v57 = vmul.f32 -1.442695, %v3119_v55  ;;  %v186_v55 = vadd.f32 %v3388_v21, %v3462_v17 }
0x1a77   :  { %3202 = vpow2.f32 %v2510_v57 }
0x1a81   :  { %v3203_v58 = vpop.eup %3202 }
0x1a82   :  { %v1531_v59 = vadd.f32 1.0, %v3203_v58 }
0x1a84   :  { %3204 = vrcp.f32 %v1531_v59 }
0x1a8e   :  { %v3205_v60 = vpop.eup %3204 }
0x1a8f   :  { %v1534_v61 = vmul.f32 2.0, %v3205_v60  ;;  %v1536_v2 = vmul.f32 %v3205_v60, %v3579_v29 }
0x1a91   :  { %v2511_v10 = vadd.f32 -1.0, %v1534_v61 }
0x1a93   :  { %1538 = vrot.lane.b32.xlu0 %v2511_v10, %s3299_s11 }
0x1b05   :  { %v1539_v62 = vpop.permute.xlu0 %1538 }
0x1b06   :  { %v1541_v63 = vmul.f32 %v3205_v60, %v1539_v62 }
0x1b08   :  { %1543 = vrot.lane.b32.xlu1 %v1541_v63, %s3300_s12 }
0x1b7a   :  { %v1544_v3 = vpop.permute.xlu1 %1543 }
0x1b7b   :  { %v3619_v4 = vadd.f32 %v1544_v3, %v1536_v2 }
0x1b7d   :  { %3206 = vtanh.f32 %v3619_v4 }
0x1b87   :  { %v3207_v6 = vpop.eup %3206 }
0x1b88   :  { %1549 = vrot.lane.b32.xlu0 %v3207_v6, %s3299_s11 }
0x1bfa   :  { %v1550_v7 = vpop.permute.xlu0 %1549 }
0x1bfb   :  { %v1552_v8 = vmul.f32 %v3205_v60, %v1550_v7 }
0x1bfd   :  { %1554 = vrot.lane.b32.xlu1 %v1552_v8, %s3300_s12 }
0x1c6f   :  { %v1555_v9 = vpop.permute.xlu1 %1554 }
0x1c70   :  { %2860 = vmatmul.mubr.msk.f32.vlgmr.msra.gmra.mrb[16].mxu0 %vm194_vm2, %v1555_v9 }
0x1c71   :  { %3063 = vmatpush3.bf16.msra.mxu0 %v3363_v15  ;;  %2870 = vmatprep.mubr.msk.f32.mxu0 %vm3297_vm0, %v3298_v1 }
0x1c72   :  { %3064 = vmatprep.subr.bf16.mxu0 %v3296_v0 }
0x1c75   :  { %3066 = vmatpush3.bf16.msra.mxu0 %v3371_v18 }
0x1c76   :  { %3067 = vmatprep.subr.bf16.mxu0 %v3296_v0 }
0x1c78   :  { %2871 = vmatmul.mubr.msk.f32.vlgmr.msra.gmra.mrb[18].mxu0 %vm194_vm2, %v1454_v53 }
0x1c79   :  { %3069 = vmatpush3.bf16.msra.mxu0 %v3396_v40  ;;  %2881 = vmatprep.mubr.msk.f32.mxu0 %vm3297_vm0, %v3298_v1 }
0x1c7a   :  { %3070 = vmatprep.subr.bf16.mxu0 %v3296_v0 }
0x1c7d   :  { %3072 = vmatpush3.bf16.msra.mxu0 %v3399_v42 }
0x1c7e   :  { %3091 = vmatprep.subr.bf16.mxu0 %v3296_v0 }
0x1d4b   :  { %v1694_v22 = vpop.f32.mrb[18].mxu0 }
0x1d4c   :  { %v1698_v23 = vadd.f32 %v1694_v22, %v181_v20  ;;  %v2872_v12 = vpop.f32.mrb[19].mxu0 }
0x1d4e   :  { %v2514_v24 = vmul.f32 -1.442695, %v1698_v23 }
0x1d50   :  { %3208 = vpow2.f32 %v2514_v24 }
0x1d5a   :  { %v3209_v25 = vpop.eup %3208 }
0x1d5b   :  { %v1702_v26 = vadd.f32 1.0, %v3209_v25 }
0x1d5d   :  { %3210 = vrcp.f32 %v1702_v26 }
0x1d67   :  { %v3211_v27 = vpop.eup %3210 }
0x1d68   :  { %v1705_v28 = vmul.f32 2.0, %v3211_v27  ;;  %v1707_v32 = vmul.f32 %v3211_v27, %v3603_v49 }
0x1d6a   :  { %v2515_v29 = vadd.f32 -1.0, %v1705_v28 }
0x1d6c   :  { %1709 = vrot.lane.b32.xlu0 %v2515_v29, %s3299_s11 }
0x1dde   :  { %v1710_v30 = vpop.permute.xlu0 %1709 }
0x1ddf   :  { %v1712_v31 = vmul.f32 %v3211_v27, %v1710_v30 }
0x1de1   :  { %1714 = vrot.lane.b32.xlu1 %v1712_v31, %s3300_s12 }
0x1e53   :  { %v1715_v13 = vpop.permute.xlu1 %1714 }
0x1e54   :  { %v3643_v33 = vadd.f32 %v1715_v13, %v1707_v32 }
0x1e56   :  { %3212 = vtanh.f32 %v3643_v33 }
0x1e60   :  { %v3213_v34 = vpop.eup %3212 }
0x1e61   :  { %1720 = vrot.lane.b32.xlu0 %v3213_v34, %s3299_s11 }
0x1ed3   :  { %v1721_v19 = vpop.permute.xlu0 %1720 }
0x1ed4   :  { %v1723_v35 = vmul.f32 %v3211_v27, %v1721_v19 }
0x1ed6   :  { %1725 = vrot.lane.b32.xlu1 %v1723_v35, %s3300_s12 }
0x1f48   :  { %v1726_v37 = vpop.permute.xlu1 %1725 }
0x1f49   :  { %2882 = vmatmul.mubr.msk.f32.vlgmr.msra.gmra.mrb[16].mxu0 %vm194_vm2, %v1726_v37 }
0x1f4a   :  { %3093 = vmatpush3.bf16.msra.mxu0 %v3342_v5  ;;  %2925 = vmatprep.mubr.msk.f32.mxu0 %vm3297_vm0, %v3298_v1 }
0x1f4b   :  { %3094 = vmatprep.subr.bf16.mxu0 %v3296_v0 }
0x1f4e   :  { %3096 = vmatpush3.bf16.msra.mxu0 %v3354_v11 }
0x1f4f   :  { %3097 = vmatprep.subr.bf16.mxu0 %v3296_v0 }
0x201c   :  { %v1795_v38 = vpop.f32.mrb[16].mxu0 }
0x201d   :  { %v3120_v39 = vadd.f32 %v3416_v47, %v1795_v38  ;;  %v2883_v41 = vpop.f32.mrb[17].mxu0 }
0x201f   :  { %v2517_v36 = vmul.f32 -1.442695, %v3120_v39 }
0x2021   :  { %3214 = vpow2.f32 %v2517_v36 }
0x202b   :  { %v3215_v43 = vpop.eup %3214 }
0x202c   :  { %v1803_v44 = vadd.f32 1.0, %v3215_v43 }
0x202e   :  { %3216 = vrcp.f32 %v1803_v44 }
0x2038   :  { %v3217_v45 = vpop.eup %3216 }
0x2039   :  { %v1806_v5 = vmul.f32 2.0, %v3217_v45  ;;  %v1808_v11 = vmul.f32 %v3217_v45, %v3619_v4 }
0x203b   :  { %v2518_v46 = vadd.f32 -1.0, %v1806_v5 }
0x203d   :  { %1810 = vrot.lane.b32.xlu0 %v2518_v46, %s3299_s11 }
0x20af   :  { %v1811_v48 = vpop.permute.xlu0 %1810 }
0x20b0   :  { %v1813_v14 = vmul.f32 %v3217_v45, %v1811_v48 }
0x20b2   :  { %1815 = vrot.lane.b32.xlu1 %v1813_v14, %s3300_s12 }
0x2124   :  { %v1816_v49 = vpop.permute.xlu1 %1815 }
0x2125   :  { %v3659_v50 = vadd.f32 %v1816_v49, %v1808_v11 }
0x2127   :  { %3218 = vtanh.f32 %v3659_v50 }
0x2131   :  { %v3219_v51 = vpop.eup %3218 }
0x2132   :  { %1821 = vrot.lane.b32.xlu0 %v3219_v51, %s3299_s11 }
0x21a4   :  { %v1822_v52 = vpop.permute.xlu0 %1821 }
0x21a5   :  { %v1824_v53 = vmul.f32 %v3217_v45, %v1822_v52 }
0x21a7   :  { %1826 = vrot.lane.b32.xlu1 %v1824_v53, %s3300_s12 }
0x2219   :  { %v1827_v54 = vpop.permute.xlu1 %1826 }
0x221a   :  { %2893 = vmatmul.mubr.msk.f32.vlgmr.msra.gmra.mrb[12].mxu1 %vm194_vm2, %v1827_v54 }
0x221b   :  { %3081 = vmatpush3.bf16.msra.mxu1 %v3363_v15  ;;  %2903 = vmatprep.mubr.msk.f32.mxu1 %vm3297_vm0, %v3298_v1 }
0x221c   :  { %3082 = vmatprep.subr.bf16.mxu1 %v3296_v0 }
0x221f   :  { %3084 = vmatpush3.bf16.msra.mxu1 %v3371_v18 }
0x2220   :  { %3085 = vmatprep.subr.bf16.mxu1 %v3296_v0 }
0x2222   :  { %2904 = vmatmul.mubr.msk.f32.vlgmr.msra.gmra.mrb[14].mxu1 %vm194_vm2, %v1726_v37 }
0x2223   :  { %3087 = vmatpush3.bf16.msra.mxu1 %v3396_v40  ;;  %2914 = vmatprep.mubr.msk.f32.mxu1 %vm3297_vm0, %v3298_v1 }
0x2224   :  { %3088 = vmatprep.subr.bf16.mxu1 %v3296_v0 }
0x2227   :  { %3090 = vmatpush3.bf16.msra.mxu1 %v3399_v42 }
0x2228   :  { %3109 = vmatprep.subr.bf16.mxu1 %v3296_v0 }
0x22f5   :  { %v1966_v56 = vpop.f32.mrb[14].mxu1 }
0x22f6   :  { %v1970_v57 = vadd.f32 %v1966_v56, %v186_v55  ;;  %v2905_v58 = vpop.f32.mrb[15].mxu1 }
0x22f8   :  { %v2521_v59 = vmul.f32 -1.442695, %v1970_v57 }
0x22fa   :  { %3220 = vpow2.f32 %v2521_v59 }
0x2304   :  { %v3221_v60 = vpop.eup %3220 }
0x2305   :  { %v1974_v61 = vadd.f32 1.0, %v3221_v60 }
0x2307   :  { %3222 = vrcp.f32 %v1974_v61 }
0x2311   :  { %v3223_v10 = vpop.eup %3222 }
0x2312   :  { %v1977_v62 = vmul.f32 2.0, %v3223_v10  ;;  %v1979_v4 = vmul.f32 %v3223_v10, %v3643_v33 }
0x2314   :  { %v2522_v63 = vadd.f32 -1.0, %v1977_v62 }
0x2316   :  { %1981 = vrot.lane.b32.xlu0 %v2522_v63, %s3299_s11  ;;  %v2370_v63 = vld [vmem:[#allocation2 + $0x68] sm:$0xff] }
0x2388   :  { %v1982_v2 = vpop.permute.xlu0 %1981 }
0x2389   :  { %v1984_v3 = vmul.f32 %v3223_v10, %v1982_v2  ;;  %v2371_v2 = vld [vmem:[#allocation2 + $0x70] sm:$0xff] }
0x238b   :  { %1986 = vrot.lane.b32.xlu1 %v1984_v3, %s3300_s12 }
0x23fd   :  { %v1987_v21 = vpop.permute.xlu1 %1986 }
0x23fe   :  { %v3683_v17 = vadd.f32 %v1987_v21, %v1979_v4  ;;  %v2372_v4 = vld [vmem:[#allocation2 + $0x78] sm:$0xff] }
0x23ff   :  { %v3113_v21 = vpack.c.bf16 %v2372_v4, %v2371_v2 }
0x2400   :  { %3224 = vtanh.f32 %v3683_v17 }
0x240a   :  { %v3225_v6 = vpop.eup %3224 }
0x240b   :  { %1992 = vrot.lane.b32.xlu0 %v3225_v6, %s3299_s11 }
0x247d   :  { %v1993_v7 = vpop.permute.xlu0 %1992 }
0x247e   :  { %v1995_v8 = vmul.f32 %v3223_v10, %v1993_v7 }
0x2480   :  { %1997 = vrot.lane.b32.xlu1 %v1995_v8, %s3300_s12 }
0x24f2   :  { %v1998_v9 = vpop.permute.xlu1 %1997 }
0x24f3   :  { %2915 = vmatmul.mubr.msk.f32.vlgmr.msra.gmra.mrb[12].mxu1 %vm194_vm2, %v1998_v9 }
0x24f4   :  { %2958 = vmatprep.mubr.msk.f32.mxu1 %vm3297_vm0, %v3298_v1 }
0x25c6   :  { %v2067_v20 = vpop.f32.mrb[12].mxu1 }
0x25c7   :  { %v3121_v22 = vadd.f32 %v3416_v47, %v2067_v20  ;;  %v2916_v23 = vpop.f32.mrb[13].mxu1 }
0x25c9   :  { %v2524_v12 = vmul.f32 -1.442695, %v3121_v22 }
0x25cb   :  { %3226 = vpow2.f32 %v2524_v12 }
0x25d5   :  { %v3227_v24 = vpop.eup %3226 }
0x25d6   :  { %v2075_v25 = vadd.f32 1.0, %v3227_v24 }
0x25d8   :  { %3228 = vrcp.f32 %v2075_v25 }
0x25e2   :  { %v3229_v26 = vpop.eup %3228 }
0x25e3   :  { %v2078_v27 = vmul.f32 2.0, %v3229_v26  ;;  %v2080_v31 = vmul.f32 %v3229_v26, %v3659_v50 }
0x25e5   :  { %v2525_v28 = vadd.f32 -1.0, %v2078_v27 }
0x25e7   :  { %2082 = vrot.lane.b32.xlu0 %v2525_v28, %s3299_s11 }
0x2659   :  { %v2083_v29 = vpop.permute.xlu0 %2082 }
0x265a   :  { %v2085_v30 = vmul.f32 %v3229_v26, %v2083_v29 }
0x265c   :  { %2087 = vrot.lane.b32.xlu1 %v2085_v30, %s3300_s12 }
0x26ce   :  { %v2088_v32 = vpop.permute.xlu1 %2087 }
0x26cf   :  { %v2090_v13 = vadd.f32 %v2088_v32, %v2080_v31 }
0x26d1   :  { %3230 = vtanh.f32 %v2090_v13 }
0x26db   :  { %v3231_v33 = vpop.eup %3230 }
0x26dc   :  { %2093 = vrot.lane.b32.xlu0 %v3231_v33, %s3299_s11 }
0x274e   :  { %v2094_v34 = vpop.permute.xlu0 %2093 }
0x274f   :  { %v2096_v19 = vmul.f32 %v3229_v26, %v2094_v34 }
0x2751   :  { %2098 = vrot.lane.b32.xlu1 %v2096_v19, %s3300_s12 }
0x27c3   :  { %v2099_v35 = vpop.permute.xlu1 %2098 }
0x27c4   :  { %2926 = vmatmul.mubr.msk.f32.vlgmr.msra.gmra.mrb[20].mxu0 %vm194_vm2, %v2099_v35 }
0x27c5   :  { %3099 = vmatpush3.bf16.msra.mxu0 %v3363_v15  ;;  %2936 = vmatprep.mubr.msk.f32.mxu0 %vm3297_vm0, %v3298_v1  ;;  %v3244_v15 = vld [vmem:[%s3745_s3] ss:$0 sm:$0xff] }
0x27c6   :  { %3100 = vmatprep.subr.bf16.mxu0 %v3296_v0  ;;  %v191_v37 = vadd.f32 %v3244_v15, %v3460_v16 }
0x27c9   :  { %3102 = vmatpush3.bf16.msra.mxu0 %v3371_v18 }
0x27ca   :  { %3103 = vmatprep.subr.bf16.mxu0 %v3296_v0 }
0x27cc   :  { %2937 = vmatmul.mubr.msk.f32.vlgmr.msra.gmra.mrb[22].mxu0 %vm194_vm2, %v1998_v9  ;;  %v2533_v9 = vld [vmem:[%s3745_s3 + $0x2] ss:$0 sm:$0xff] }
0x27cd   :  { %3105 = vmatpush3.bf16.msra.mxu0 %v3396_v40  ;;  %2947 = vmatprep.mubr.msk.f32.mxu0 %vm3297_vm0, %v3298_v1 }
0x27ce   :  { %3106 = vmatprep.subr.bf16.mxu0 %v3296_v0 }
0x27d1   :  { %3108 = vmatpush3.bf16.msra.mxu0 %v3399_v42 }
0x289f   :  { %v2238_v18 = vpop.f32.mrb[22].mxu0 }
0x28a0   :  { %v2242_v38 = vadd.f32 %v2238_v18, %v191_v37  ;;  %v2938_v39 = vpop.f32.mrb[23].mxu0 }
0x28a2   :  { %v2528_v41 = vmul.f32 -1.442695, %v2242_v38 }
0x28a4   :  { %3232 = vpow2.f32 %v2528_v41 }
0x28ae   :  { %v3233_v36 = vpop.eup %3232 }
0x28af   :  { %v2246_v40 = vadd.f32 1.0, %v3233_v36 }
0x28b1   :  { %3234 = vrcp.f32 %v2246_v40 }
0x28bb   :  { %v3235_v43 = vpop.eup %3234 }
0x28bc   :  { %v2249_v1 = vmul.f32 2.0, %v3235_v43  ;;  %v2251_v5 = vmul.f32 %v3235_v43, %v3683_v17 }
0x28be   :  { %v2529_v44 = vadd.f32 -1.0, %v2249_v1 }
0x28c0   :  { %2253 = vrot.lane.b32.xlu0 %v2529_v44, %s3299_s11 }
0x2932   :  { %v2254_v42 = vpop.permute.xlu0 %2253 }
0x2933   :  { %v2256_v45 = vmul.f32 %v3235_v43, %v2254_v42 }
0x2935   :  { %2258 = vrot.lane.b32.xlu1 %v2256_v45, %s3300_s12 }
0x29a7   :  { %v2259_v16 = vpop.permute.xlu1 %2258 }
0x29a8   :  { %v2261_v46 = vadd.f32 %v2259_v16, %v2251_v5 }
0x29aa   :  { %3236 = vtanh.f32 %v2261_v46 }
0x29b4   :  { %v3237_v48 = vpop.eup %3236 }
0x29b5   :  { %2264 = vrot.lane.b32.xlu0 %v3237_v48, %s3299_s11 }
0x2a27   :  { %v2265_v14 = vpop.permute.xlu0 %2264 }
0x2a28   :  { %v2267_v11 = vmul.f32 %v3235_v43, %v2265_v14 }
0x2a2a   :  { %2269 = vrot.lane.b32.xlu1 %v2267_v11, %s3300_s12 }
0x2a9c   :  { %v2270_v49 = vpop.permute.xlu1 %2269 }
0x2a9d   :  { %2948 = vmatmul.mubr.msk.f32.vlgmr.msra.gmra.mrb[20].mxu0 %vm194_vm2, %v2270_v49 }
0x2b70   :  { %v2339_v50 = vpop.f32.mrb[20].mxu0 }
0x2b71   :  { %v3122_v51 = vadd.f32 %v3416_v47, %v2339_v50  ;;  %v2949_v52 = vpop.f32.mrb[21].mxu0  ;;  %v2369_v47 = vld [vmem:[#allocation2 + $0x60] sm:$0xff] }
0x2b72   :  { %v3110_v3 = vpack.c.bf16 %v2370_v63, %v2369_v47 }
0x2b73   :  { %v2531_v53 = vmul.f32 -1.442695, %v3122_v51 }
0x2b74   :  { %3111 = vmatpush3.bf16.msra.mxu1 %v3110_v3 }
0x2b75   :  { %3238 = vpow2.f32 %v2531_v53  ;;  %3112 = vmatprep.subr.bf16.mxu1 %v3296_v0 }
0x2b78   :  { %3114 = vmatpush3.bf16.msra.mxu1 %v3113_v21 }
0x2b7f   :  { %v3239_v54 = vpop.eup %3238 }
0x2b80   :  { %v2347_v55 = vadd.f32 1.0, %v3239_v54 }
0x2b82   :  { %3240 = vrcp.f32 %v2347_v55 }
0x2b8c   :  { %v3241_v56 = vpop.eup %3240 }
0x2b8d   :  { %v2350_v57 = vmul.f32 2.0, %v3241_v56  ;;  %v2352_v61 = vmul.f32 %v3241_v56, %v2090_v13 }
0x2b8f   :  { %v2532_v58 = vadd.f32 -1.0, %v2350_v57 }
0x2b91   :  { %2354 = vrot.lane.b32.xlu0 %v2532_v58, %s3299_s11 }
0x2c03   :  { %v2355_v59 = vpop.permute.xlu0 %2354 }
0x2c04   :  { %v2357_v60 = vmul.f32 %v3241_v56, %v2355_v59 }
0x2c06   :  { %2359 = vrot.lane.b32.xlu1 %v2357_v60, %s3300_s12 }
0x2c78   :  { %v2360_v10 = vpop.permute.xlu1 %2359 }
0x2c79   :  { %v2362_v62 = vadd.f32 %v2360_v10, %v2352_v61 }
0x2c7b   :  { %3242 = vtanh.f32 %v2362_v62 }
0x2c85   :  { %v3243_v17 = vpop.eup %3242 }
0x2c86   :  { %2365 = vrot.lane.b32.xlu0 %v3243_v17, %s3299_s11 }
0x2cf8   :  { %v2366_v6 = vpop.permute.xlu0 %2365 }
0x2cf9   :  { %v2368_v7 = vmul.f32 %v3241_v56, %v2366_v6 }
0x2cfb   :  { %2379 = vrot.lane.b32.xlu1 %v2368_v7, %s3300_s12 }
0x2d6d   :  { %v2380_v8 = vpop.permute.xlu1 %2379 }
0x2d6e   :  { %2959 = vmatmul.mubr.msk.f32.vlgmr.msra.gmra.mrb[16].mxu1 %vm194_vm2, %v2380_v8 }
0x2e41   :  { %v2449_v20 = vpop.f32.mrb[16].mxu1 }
0x2e42   :  { %v2450_v22 = vadd.f32 %v2533_v9, %v2449_v20  ;;  %v2960_v0 = vpop.f32.mrb[17].mxu1 }
0x2e44   :  { %2453 = vst [vmem:[#allocation5] sm:$0xff] %v2450_v22 }
0x2e45   :  { %3278 = shalt.err (!%p3275_p12)
}
0x2e46   :  { %s3279_s8 = scalar_lea.hbm %s3746_s4, 128 }
0x2e47   :  { %p3280_p13 = scmp.ne.s32.totalorder %s3746_s4, %s3279_s8  ;;  %p3283_p0 = scmp.lt.u32.totalorder %s3279_s8, %s3746_s4 }
0x2e49   :  { %p3285_p1 = pnand %p3283_p0, %p3280_p13 }
0x2e4b   :  { %3288 = shalt.err (!%p3285_p1)
}
0x2e4c   :  { %2463 = dma.vmem_to_hbm [thread:$0]  %s2461_s2, 128, %s3746_s4, [#allocation4]  }
0x2e4d   :  { %3291 = dma.done.wait [#allocation4], 128  }
0x2e4e   :  { %3292 = vsyncadd [#allocation4], 4294967168 }
0x2e4f   :  { %2467 = vsyncpa [#allocation3], 1 }
0x2e50   :  { %2468 = vsyncpa [#allocation4], 1 }

</bundles_post_ra>
